<compile_context>
chip_gen: v7x
topology: tpu7x:2x2x1
jax: 0.10.0
libtpu: 0.0.40
codegen_flags: <defaults>
</compile_context>

<pallas_src>
import functools

import jax
import jax.numpy as jnp
from jax import lax
from jax.experimental import pallas as pl
from jax.experimental.pallas import tpu as pltpu


# ----------------------------------------------------------------------------
# Fused per-batch kernel: posembed head + (self_attn, LN, FFN, LN)
# ----------------------------------------------------------------------------
def fused_decoder_kernel(q_ref, xyz_ref,
                         pe_w1_ref, pe_b1_ref, pe_s_ref, pe_t_ref, pe_w2_ref, pe_b2_ref,
                         wq_ref, bq_ref, wk_ref, bk_ref, wv_ref, bv_ref, wo3_ref, bo_ref,
                         ln1g_ref, ln1b_ref,
                         wff1_ref, bff1_ref, wff2_ref, bff2_ref,
                         ln2g_ref, ln2b_ref,
                         out_ref, *, num_heads, head_dim):
    f32 = jnp.float32
    bf16 = jnp.bfloat16
    H, hd = num_heads, head_dim

    x = q_ref[0]          # (Nq, D) f32   query rows of this batch
    xyz = xyz_ref[0]      # (Nq, Cin) f32 query_pos rows of this batch

    # ---- PositionEmbeddingLearned: Conv1d(k=1) -> BatchNorm1d(eval, folded) -> ReLU -> Conv1d(k=1)
    h0 = jnp.dot(xyz.astype(bf16), pe_w1_ref[...], preferred_element_type=f32) + pe_b1_ref[...]
    h0 = jnp.maximum(h0 * pe_s_ref[...] + pe_t_ref[...], 0.0)
    pos = jnp.dot(h0.astype(bf16), pe_w2_ref[...], preferred_element_type=f32) + pe_b2_ref[...]

    # ---- multi-head self-attention: q = k = query + pos_embed, v = query ----
    qk = (x + pos).astype(bf16)
    xb = x.astype(bf16)
    # Full-width projections (single matmul each, contraction over full D -> best MXU fill).
    Q = jnp.dot(qk, wq_ref[...], preferred_element_type=f32) + bq_ref[...]
    K = jnp.dot(qk, wk_ref[...], preferred_element_type=f32) + bk_ref[...]
    V = jnp.dot(xb, wv_ref[...], preferred_element_type=f32) + bv_ref[...]
    Qb, Kb, Vb = Q.astype(bf16), K.astype(bf16), V.astype(bf16)

    scale = 1.0 / float(hd) ** 0.5
    acc = jnp.zeros_like(x)  # (Nq, D) f32, accumulates the output projection head by head
    # Static unroll over heads: per-head temporaries are only (Nq,Nq)/(Nq,hd) for one batch,
    # so unrolled live ranges stay tiny (a head/grid axis would be used for very large Nq).
    for h in range(H):
        sl = slice(h * hd, (h + 1) * hd)
        Qh, Kh, Vh = Qb[:, sl], Kb[:, sl], Vb[:, sl]                      # (Nq, hd) bf16
        s = lax.dot_general(Qh, Kh, (((1,), (1,)), ((), ())),
                            preferred_element_type=f32) * scale           # (Nq, Nq)
        s = s - jnp.max(s, axis=-1, keepdims=True)
        e = jnp.exp(s)
        p = e * pl.reciprocal(jnp.sum(e, axis=-1, keepdims=True), approx=True)
        head_out = jnp.dot(p.astype(bf16), Vh, preferred_element_type=f32)  # (Nq, hd)
        # Fold this head's slice of the output projection (no lane-strided writes / masks).
        acc = acc + jnp.dot(head_out.astype(bf16), wo3_ref[h], preferred_element_type=f32)
    attn = acc + bo_ref[...]

    # ---- residual + LayerNorm ----
    x = x + attn
    mu = jnp.mean(x, axis=-1, keepdims=True)
    var = jnp.mean((x - mu) ** 2, axis=-1, keepdims=True)
    x = (x - mu) * lax.rsqrt(var + 1e-5) * ln1g_ref[...] + ln1b_ref[...]

    # ---- FFN + residual + LayerNorm ----
    hf = jnp.maximum(
        jnp.dot(x.astype(bf16), wff1_ref[...], preferred_element_type=f32) + bff1_ref[...], 0.0)
    x = x + jnp.dot(hf.astype(bf16), wff2_ref[...], preferred_element_type=f32) + bff2_ref[...]
    mu = jnp.mean(x, axis=-1, keepdims=True)
    var = jnp.mean((x - mu) ** 2, axis=-1, keepdims=True)
    x = (x - mu) * lax.rsqrt(var + 1e-5) * ln2g_ref[...] + ln2b_ref[...]

    out_ref[0] = x  # (Nq, D) for this batch


# ----------------------------------------------------------------------------
# Module wrapper
# ----------------------------------------------------------------------------
def transformer_decoder_layer_with_pos(query, query_pos, reference_points,
                                       valid_ratios, params, num_heads=4):
    """query: (Nq, B, D); query_pos: (B, Nq, Cin); reference_points: (B, Nq, 2|4);
    valid_ratios: (B, L, 2). Returns (output (Nq, B, D), reference_points_input)."""
    Nq, B, D = query.shape
    Cin = query_pos.shape[-1]
    head_dim = D // num_heads
    Dff = params["wff1_t"].shape[1]

    # reference_points_input in plain XLA (lane-sparse 4-D output, shares nothing with the
    # transformer math -> keep it out of the kernel).
    if reference_points.shape[-1] == 4:
        vr = jnp.concatenate([valid_ratios, valid_ratios], axis=-1)
    else:
        assert reference_points.shape[-1] == 2
        vr = valid_ratios
    reference_points_input = reference_points[:, :, None, :] * vr[:, None, :, :]

    # Fold BatchNorm1d (eval mode) into a per-channel affine.
    eps = 1e-5
    bn_scale = params["pe_bn_gamma"] * lax.rsqrt(params["pe_bn_var"] + eps)
    bn_shift = params["pe_bn_beta"] - params["pe_bn_mean"] * bn_scale

    # Reorder query to per-batch row blocks in the wrapper (one XLA transpose, no in-kernel
    # permutation matmul); query_pos is already (B, Nq, Cin).
    q_b = jnp.transpose(query, (1, 0, 2))                      # (B, Nq, D)
    # Output projection weight pre-split per head: rows h*hd:(h+1)*hd -> (H, hd, D).
    wo3 = params["wo_t"].reshape(num_heads, head_dim, D)

    args = (q_b, query_pos,
            params["pe_w1_t"], params["pe_b1"], bn_scale, bn_shift,
            params["pe_w2_t"], params["pe_b2"],
            params["wq_t"], params["bq"], params["wk_t"], params["bk"],
            params["wv_t"], params["bv"], wo3, params["bo"],
            params["ln1_g"], params["ln1_b"],
            params["wff1_t"], params["bff1"], params["wff2_t"], params["bff2"],
            params["ln2_g"], params["ln2_b"])

    # Weights: constant index_maps -> stay VMEM-resident across batch grid steps.
    const2 = lambda shape: pl.BlockSpec(shape, lambda b: (0, 0))
    const3 = lambda shape: pl.BlockSpec(shape, lambda b: (0, 0, 0))
    in_specs = [
        pl.BlockSpec((1, Nq, D), lambda b: (b, 0, 0)),         # query (per batch)
        pl.BlockSpec((1, Nq, Cin), lambda b: (b, 0, 0)),       # query_pos (per batch)
        const2((Cin, D)), const2((1, D)), const2((1, D)), const2((1, D)),
        const2((D, D)), const2((1, D)),
        const2((D, D)), const2((1, D)),
        const2((D, D)), const2((1, D)),
        const2((D, D)), const2((1, D)),
        const3((num_heads, head_dim, D)), const2((1, D)),
        const2((1, D)), const2((1, D)),
        const2((D, Dff)), const2((1, Dff)),
        const2((Dff, D)), const2((1, D)),
        const2((1, D)), const2((1, D)),
    ]

    kernel = functools.partial(fused_decoder_kernel, num_heads=num_heads, head_dim=head_dim)
    out_b = pl.pallas_call(
        kernel,
        out_shape=jax.ShapeDtypeStruct((B, Nq, D), jnp.float32),
        grid=(B,),
        in_specs=in_specs,
        out_specs=pl.BlockSpec((1, Nq, D), lambda b: (b, 0, 0)),
        compiler_params=pltpu.CompilerParams(
            dimension_semantics=("parallel",),      # batches shard across v7x TensorCores
            # Explicit scoped-VMEM limit; re-derive with headroom per generation
            # (v5e/v6e: 128 MiB physical, v7x: 64 MiB).
            vmem_limit_bytes=32 * 1024 * 1024),
    )(*args)

    return jnp.transpose(out_b, (1, 0, 2)), reference_points_input


def init_params(key, cin, d, dff):
    """Weight matrices are stored pre-transposed (== torch_weight.T) and in bf16; biases,
    BN stats and LN affines stay f32."""
    ks = jax.random.split(key, 8)

    def w(k, shape, scale=0.05):
        return (scale * jax.random.normal(k, shape)).astype(jnp.bfloat16)

    z = lambda s: jnp.zeros(s, jnp.float32)
    o = lambda s: jnp.ones(s, jnp.float32)
    return dict(
        # PositionEmbeddingLearned: Conv1d(cin->d,1), BN1d(d), Conv1d(d->d,1)
        pe_w1_t=w(ks[0], (cin, d)), pe_b1=z((1, d)),
        pe_bn_gamma=o((1, d)), pe_bn_beta=z((1, d)),
        pe_bn_mean=z((1, d)), pe_bn_var=o((1, d)),
        pe_w2_t=w(ks[1], (d, d)), pe_b2=z((1, d)),
        # representative transformer layer (self-attn + FFN, post-norm)
        wq_t=w(ks[2], (d, d)), bq=z((1, d)),
        wk_t=w(ks[3], (d, d)), bk=z((1, d)),
        wv_t=w(ks[4], (d, d)), bv=z((1, d)),
        wo_t=w(ks[5], (d, d)), bo=z((1, d)),
        ln1_g=o((1, d)), ln1_b=z((1, d)),
        wff1_t=w(ks[6], (d, dff)), bff1=z((1, dff)),
        wff2_t=w(ks[7], (dff, d)), bff2=z((1, d)),
        ln2_g=o((1, d)), ln2_b=z((1, d)),
    )


if __name__ == "__main__":
    B, Nq, D, Cin, H, Dff, L = 2, 8, 32, 3, 4, 64, 4
    key = jax.random.PRNGKey(0)
    k1, k2, k3, k4, kp = jax.random.split(key, 5)

    query = jax.random.normal(k1, (Nq, B, D), jnp.float32)
    query_pos = jax.random.normal(k2, (B, Nq, Cin), jnp.float32)
    reference_points = jax.random.uniform(k3, (B, Nq, 2), jnp.float32)
    valid_ratios = jax.random.uniform(k4, (B, L, 2), jnp.float32, minval=0.5, maxval=1.0)
    params = init_params(kp, Cin, D, Dff)

    output, ref_pts_input = transformer_decoder_layer_with_pos(
        query, query_pos, reference_points, valid_ratios, params, num_heads=H)
    jax.block_until_ready((output, ref_pts_input))

    assert output.shape == (Nq, B, D)
    assert ref_pts_input.shape == (B, Nq, L, 2)
    print("KERNEL_OK")
</pallas_src>

<mosaic_0001>
module attributes {stable_mosaic.version = 11 : i64} {
  func.func @fused_decoder_kernel(%arg0: i32, %arg1: memref<1x8x32xf32, #tpu.memory_space<vmem>>, %arg2: memref<1x8x3xf32, #tpu.memory_space<vmem>>, %arg3: memref<3x32xbf16, #tpu.memory_space<vmem>>, %arg4: memref<1x32xf32, #tpu.memory_space<vmem>>, %arg5: memref<1x32xf32, #tpu.memory_space<vmem>>, %arg6: memref<1x32xf32, #tpu.memory_space<vmem>>, %arg7: memref<32x32xbf16, #tpu.memory_space<vmem>>, %arg8: memref<1x32xf32, #tpu.memory_space<vmem>>, %arg9: memref<32x32xbf16, #tpu.memory_space<vmem>>, %arg10: memref<1x32xf32, #tpu.memory_space<vmem>>, %arg11: memref<32x32xbf16, #tpu.memory_space<vmem>>, %arg12: memref<1x32xf32, #tpu.memory_space<vmem>>, %arg13: memref<32x32xbf16, #tpu.memory_space<vmem>>, %arg14: memref<1x32xf32, #tpu.memory_space<vmem>>, %arg15: memref<4x8x32xbf16, #tpu.memory_space<vmem>>, %arg16: memref<1x32xf32, #tpu.memory_space<vmem>>, %arg17: memref<1x32xf32, #tpu.memory_space<vmem>>, %arg18: memref<1x32xf32, #tpu.memory_space<vmem>>, %arg19: memref<32x64xbf16, #tpu.memory_space<vmem>>, %arg20: memref<1x64xf32, #tpu.memory_space<vmem>>, %arg21: memref<64x32xbf16, #tpu.memory_space<vmem>>, %arg22: memref<1x32xf32, #tpu.memory_space<vmem>>, %arg23: memref<1x32xf32, #tpu.memory_space<vmem>>, %arg24: memref<1x32xf32, #tpu.memory_space<vmem>>, %arg25: memref<1x8x32xf32, #tpu.memory_space<vmem>>) attributes {dimension_semantics = [#tpu.dimension_semantics<parallel>], iteration_bounds = array<i64: 2>, scalar_prefetch = 0 : i64, scratch_operands = 0 : i64, tpu.core_type = #tpu.core_type<tc>, window_params = [{transform_indices = @transform_0, window_bounds = array<i64: 1, 8, 32>}, {transform_indices = @transform_1, window_bounds = array<i64: 1, 8, 3>}, {pipeline_mode = #tpu.pipeline_mode<synchronous>, transform_indices = @transform_2, window_bounds = array<i64: 3, 32>}, {pipeline_mode = #tpu.pipeline_mode<synchronous>, transform_indices = @transform_3, window_bounds = array<i64: 1, 32>}, {pipeline_mode = #tpu.pipeline_mode<synchronous>, transform_indices = @transform_4, window_bounds = array<i64: 1, 32>}, {pipeline_mode = #tpu.pipeline_mode<synchronous>, transform_indices = @transform_5, window_bounds = array<i64: 1, 32>}, {pipeline_mode = #tpu.pipeline_mode<synchronous>, transform_indices = @transform_6, window_bounds = array<i64: 32, 32>}, {pipeline_mode = #tpu.pipeline_mode<synchronous>, transform_indices = @transform_7, window_bounds = array<i64: 1, 32>}, {pipeline_mode = #tpu.pipeline_mode<synchronous>, transform_indices = @transform_8, window_bounds = array<i64: 32, 32>}, {pipeline_mode = #tpu.pipeline_mode<synchronous>, transform_indices = @transform_9, window_bounds = array<i64: 1, 32>}, {pipeline_mode = #tpu.pipeline_mode<synchronous>, transform_indices = @transform_10, window_bounds = array<i64: 32, 32>}, {pipeline_mode = #tpu.pipeline_mode<synchronous>, transform_indices = @transform_11, window_bounds = array<i64: 1, 32>}, {pipeline_mode = #tpu.pipeline_mode<synchronous>, transform_indices = @transform_12, window_bounds = array<i64: 32, 32>}, {pipeline_mode = #tpu.pipeline_mode<synchronous>, transform_indices = @transform_13, window_bounds = array<i64: 1, 32>}, {pipeline_mode = #tpu.pipeline_mode<synchronous>, transform_indices = @transform_14, window_bounds = array<i64: 4, 8, 32>}, {pipeline_mode = #tpu.pipeline_mode<synchronous>, transform_indices = @transform_15, window_bounds = array<i64: 1, 32>}, {pipeline_mode = #tpu.pipeline_mode<synchronous>, transform_indices = @transform_16, window_bounds = array<i64: 1, 32>}, {pipeline_mode = #tpu.pipeline_mode<synchronous>, transform_indices = @transform_17, window_bounds = array<i64: 1, 32>}, {pipeline_mode = #tpu.pipeline_mode<synchronous>, transform_indices = @transform_18, window_bounds = array<i64: 32, 64>}, {pipeline_mode = #tpu.pipeline_mode<synchronous>, transform_indices = @transform_19, window_bounds = array<i64: 1, 64>}, {pipeline_mode = #tpu.pipeline_mode<synchronous>, transform_indices = @transform_20, window_bounds = array<i64: 64, 32>}, {pipeline_mode = #tpu.pipeline_mode<synchronous>, transform_indices = @transform_21, window_bounds = array<i64: 1, 32>}, {pipeline_mode = #tpu.pipeline_mode<synchronous>, transform_indices = @transform_22, window_bounds = array<i64: 1, 32>}, {pipeline_mode = #tpu.pipeline_mode<synchronous>, transform_indices = @transform_23, window_bounds = array<i64: 1, 32>}, {transform_indices = @transform_24, window_bounds = array<i64: 1, 8, 32>}]} {
    %c0 = arith.constant 0 : index
    %c0_0 = arith.constant 0 : index
    %c0_1 = arith.constant 0 : index
    %0 = vector.load %arg1[%c0, %c0_0, %c0_1] : memref<1x8x32xf32, #tpu.memory_space<vmem>>, vector<1x8x32xf32>
    %1 = vector.shape_cast %0 : vector<1x8x32xf32> to vector<8x32xf32>
    %c0_2 = arith.constant 0 : index
    %c0_3 = arith.constant 0 : index
    %c0_4 = arith.constant 0 : index
    %2 = vector.load %arg2[%c0_2, %c0_3, %c0_4] : memref<1x8x3xf32, #tpu.memory_space<vmem>>, vector<1x8x3xf32>
    %3 = vector.shape_cast %2 : vector<1x8x3xf32> to vector<8x3xf32>
    %4 = arith.truncf %3 : vector<8x3xf32> to vector<8x3xbf16>
    %c0_5 = arith.constant 0 : index
    %c0_6 = arith.constant 0 : index
    %5 = vector.load %arg3[%c0_5, %c0_6] : memref<3x32xbf16, #tpu.memory_space<vmem>>, vector<3x32xbf16>
    %cst = arith.constant dense<0.000000e+00> : vector<8x32xf32>
    %6 = tpu.matmul %4, %5, %cst {dimension_numbers = #tpu.dot_dimension_numbers<[1], [0], [0], [1], [0, 0, 1, 1], [], []>} : vector<8x3xbf16>, vector<3x32xbf16>, vector<8x32xf32> -> vector<8x32xf32>
    %c0_7 = arith.constant 0 : index
    %c0_8 = arith.constant 0 : index
    %7 = vector.load %arg4[%c0_7, %c0_8] : memref<1x32xf32, #tpu.memory_space<vmem>>, vector<1x32xf32>
    %8 = vector.broadcast %7 : vector<1x32xf32> to vector<8x32xf32>
    %9 = arith.addf %6, %8 : vector<8x32xf32>
    %c0_9 = arith.constant 0 : index
    %c0_10 = arith.constant 0 : index
    %10 = vector.load %arg5[%c0_9, %c0_10] : memref<1x32xf32, #tpu.memory_space<vmem>>, vector<1x32xf32>
    %11 = vector.broadcast %10 : vector<1x32xf32> to vector<8x32xf32>
    %12 = arith.mulf %9, %11 : vector<8x32xf32>
    %c0_11 = arith.constant 0 : index
    %c0_12 = arith.constant 0 : index
    %13 = vector.load %arg6[%c0_11, %c0_12] : memref<1x32xf32, #tpu.memory_space<vmem>>, vector<1x32xf32>
    %14 = vector.broadcast %13 : vector<1x32xf32> to vector<8x32xf32>
    %15 = arith.addf %12, %14 : vector<8x32xf32>
    %cst_13 = arith.constant 0.000000e+00 : f32
    %16 = vector.broadcast %cst_13 : f32 to vector<8x32xf32>
    %17 = arith.maximumf %15, %16 : vector<8x32xf32>
    %18 = arith.truncf %17 : vector<8x32xf32> to vector<8x32xbf16>
    %c0_14 = arith.constant 0 : index
    %c0_15 = arith.constant 0 : index
    %19 = vector.load %arg7[%c0_14, %c0_15] : memref<32x32xbf16, #tpu.memory_space<vmem>>, vector<32x32xbf16>
    %cst_16 = arith.constant dense<0.000000e+00> : vector<8x32xf32>
    %20 = tpu.matmul %18, %19, %cst_16 {dimension_numbers = #tpu.dot_dimension_numbers<[1], [0], [0], [1], [0, 0, 1, 1], [], []>} : vector<8x32xbf16>, vector<32x32xbf16>, vector<8x32xf32> -> vector<8x32xf32>
    %c0_17 = arith.constant 0 : index
    %c0_18 = arith.constant 0 : index
    %21 = vector.load %arg8[%c0_17, %c0_18] : memref<1x32xf32, #tpu.memory_space<vmem>>, vector<1x32xf32>
    %22 = vector.broadcast %21 : vector<1x32xf32> to vector<8x32xf32>
    %23 = arith.addf %20, %22 : vector<8x32xf32>
    %24 = arith.addf %1, %23 : vector<8x32xf32>
    %25 = arith.truncf %24 : vector<8x32xf32> to vector<8x32xbf16>
    %26 = arith.truncf %1 : vector<8x32xf32> to vector<8x32xbf16>
    %c0_19 = arith.constant 0 : index
    %c0_20 = arith.constant 0 : index
    %27 = vector.load %arg9[%c0_19, %c0_20] : memref<32x32xbf16, #tpu.memory_space<vmem>>, vector<32x32xbf16>
    %cst_21 = arith.constant dense<0.000000e+00> : vector<8x32xf32>
    %28 = tpu.matmul %25, %27, %cst_21 {dimension_numbers = #tpu.dot_dimension_numbers<[1], [0], [0], [1], [0, 0, 1, 1], [], []>} : vector<8x32xbf16>, vector<32x32xbf16>, vector<8x32xf32> -> vector<8x32xf32>
    %c0_22 = arith.constant 0 : index
    %c0_23 = arith.constant 0 : index
    %29 = vector.load %arg10[%c0_22, %c0_23] : memref<1x32xf32, #tpu.memory_space<vmem>>, vector<1x32xf32>
    %30 = vector.broadcast %29 : vector<1x32xf32> to vector<8x32xf32>
    %31 = arith.addf %28, %30 : vector<8x32xf32>
    %c0_24 = arith.constant 0 : index
    %c0_25 = arith.constant 0 : index
    %32 = vector.load %arg11[%c0_24, %c0_25] : memref<32x32xbf16, #tpu.memory_space<vmem>>, vector<32x32xbf16>
    %cst_26 = arith.constant dense<0.000000e+00> : vector<8x32xf32>
    %33 = tpu.matmul %25, %32, %cst_26 {dimension_numbers = #tpu.dot_dimension_numbers<[1], [0], [0], [1], [0, 0, 1, 1], [], []>} : vector<8x32xbf16>, vector<32x32xbf16>, vector<8x32xf32> -> vector<8x32xf32>
    %c0_27 = arith.constant 0 : index
    %c0_28 = arith.constant 0 : index
    %34 = vector.load %arg12[%c0_27, %c0_28] : memref<1x32xf32, #tpu.memory_space<vmem>>, vector<1x32xf32>
    %35 = vector.broadcast %34 : vector<1x32xf32> to vector<8x32xf32>
    %36 = arith.addf %33, %35 : vector<8x32xf32>
    %c0_29 = arith.constant 0 : index
    %c0_30 = arith.constant 0 : index
    %37 = vector.load %arg13[%c0_29, %c0_30] : memref<32x32xbf16, #tpu.memory_space<vmem>>, vector<32x32xbf16>
    %cst_31 = arith.constant dense<0.000000e+00> : vector<8x32xf32>
    %38 = tpu.matmul %26, %37, %cst_31 {dimension_numbers = #tpu.dot_dimension_numbers<[1], [0], [0], [1], [0, 0, 1, 1], [], []>} : vector<8x32xbf16>, vector<32x32xbf16>, vector<8x32xf32> -> vector<8x32xf32>
    %c0_32 = arith.constant 0 : index
    %c0_33 = arith.constant 0 : index
    %39 = vector.load %arg14[%c0_32, %c0_33] : memref<1x32xf32, #tpu.memory_space<vmem>>, vector<1x32xf32>
    %40 = vector.broadcast %39 : vector<1x32xf32> to vector<8x32xf32>
    %41 = arith.addf %38, %40 : vector<8x32xf32>
    %42 = arith.truncf %31 : vector<8x32xf32> to vector<8x32xbf16>
    %43 = arith.truncf %36 : vector<8x32xf32> to vector<8x32xbf16>
    %44 = arith.truncf %41 : vector<8x32xf32> to vector<8x32xbf16>
    %cst_34 = arith.constant 0.000000e+00 : f32
    %45 = vector.broadcast %cst_34 : f32 to vector<8x32xf32>
    %46 = vector.extract_strided_slice %42 {offsets = [0, 0], sizes = [8, 8], strides = [1, 1]} : vector<8x32xbf16> to vector<8x8xbf16>
    %47 = vector.extract_strided_slice %43 {offsets = [0, 0], sizes = [8, 8], strides = [1, 1]} : vector<8x32xbf16> to vector<8x8xbf16>
    %48 = vector.extract_strided_slice %44 {offsets = [0, 0], sizes = [8, 8], strides = [1, 1]} : vector<8x32xbf16> to vector<8x8xbf16>
    %cst_35 = arith.constant dense<0.000000e+00> : vector<8x8xf32>
    %49 = tpu.matmul %46, %47, %cst_35 {dimension_numbers = #tpu.dot_dimension_numbers<[1], [1], [0], [0], [0, 0, 1, 0], [], []>} : vector<8x8xbf16>, vector<8x8xbf16>, vector<8x8xf32> -> vector<8x8xf32>
    %cst_36 = arith.constant 0.353553385 : f32
    %50 = vector.broadcast %cst_36 : f32 to vector<8x8xf32>
    %51 = arith.mulf %49, %50 : vector<8x8xf32>
    %cst_37 = arith.constant dense<0xFF800000> : vector<8xf32>
    %52 = vector.multi_reduction <maximumf>, %51, %cst_37 [1] : vector<8x8xf32> to vector<8xf32>
    %53 = vector.shape_cast %52 : vector<8xf32> to vector<8x1xf32>
    %54 = vector.broadcast %53 : vector<8x1xf32> to vector<8x8xf32>
    %55 = arith.subf %51, %54 : vector<8x8xf32>
    %56 = math.exp %55 : vector<8x8xf32>
    %cst_38 = arith.constant dense<0.000000e+00> : vector<8xf32>
    %57 = vector.multi_reduction <add>, %56, %cst_38 [1] : vector<8x8xf32> to vector<8xf32>
    %58 = vector.shape_cast %57 : vector<8xf32> to vector<8x1xf32>
    %59 = tpu.reciprocal %58 {approx = true} : vector<8x1xf32> -> vector<8x1xf32>
    %60 = vector.broadcast %59 : vector<8x1xf32> to vector<8x8xf32>
    %61 = arith.mulf %56, %60 : vector<8x8xf32>
    %62 = arith.truncf %61 : vector<8x8xf32> to vector<8x8xbf16>
    %cst_39 = arith.constant dense<0.000000e+00> : vector<8x8xf32>
    %63 = tpu.matmul %62, %48, %cst_39 {dimension_numbers = #tpu.dot_dimension_numbers<[1], [0], [0], [1], [0, 0, 1, 1], [], []>} : vector<8x8xbf16>, vector<8x8xbf16>, vector<8x8xf32> -> vector<8x8xf32>
    %64 = arith.truncf %63 : vector<8x8xf32> to vector<8x8xbf16>
    %c0_40 = arith.constant 0 : index
    %c0_41 = arith.constant 0 : index
    %c0_42 = arith.constant 0 : index
    %65 = vector.load %arg15[%c0_40, %c0_41, %c0_42] : memref<4x8x32xbf16, #tpu.memory_space<vmem>>, vector<1x8x32xbf16>
    %66 = vector.shape_cast %65 : vector<1x8x32xbf16> to vector<8x32xbf16>
    %cst_43 = arith.constant dense<0.000000e+00> : vector<8x32xf32>
    %67 = tpu.matmul %64, %66, %cst_43 {dimension_numbers = #tpu.dot_dimension_numbers<[1], [0], [0], [1], [0, 0, 1, 1], [], []>} : vector<8x8xbf16>, vector<8x32xbf16>, vector<8x32xf32> -> vector<8x32xf32>
    %68 = arith.addf %45, %67 : vector<8x32xf32>
    %69 = vector.extract_strided_slice %42 {offsets = [0, 8], sizes = [8, 8], strides = [1, 1]} : vector<8x32xbf16> to vector<8x8xbf16>
    %70 = vector.extract_strided_slice %43 {offsets = [0, 8], sizes = [8, 8], strides = [1, 1]} : vector<8x32xbf16> to vector<8x8xbf16>
    %71 = vector.extract_strided_slice %44 {offsets = [0, 8], sizes = [8, 8], strides = [1, 1]} : vector<8x32xbf16> to vector<8x8xbf16>
    %cst_44 = arith.constant dense<0.000000e+00> : vector<8x8xf32>
    %72 = tpu.matmul %69, %70, %cst_44 {dimension_numbers = #tpu.dot_dimension_numbers<[1], [1], [0], [0], [0, 0, 1, 0], [], []>} : vector<8x8xbf16>, vector<8x8xbf16>, vector<8x8xf32> -> vector<8x8xf32>
    %cst_45 = arith.constant 0.353553385 : f32
    %73 = vector.broadcast %cst_45 : f32 to vector<8x8xf32>
    %74 = arith.mulf %72, %73 : vector<8x8xf32>
    %cst_46 = arith.constant dense<0xFF800000> : vector<8xf32>
    %75 = vector.multi_reduction <maximumf>, %74, %cst_46 [1] : vector<8x8xf32> to vector<8xf32>
    %76 = vector.shape_cast %75 : vector<8xf32> to vector<8x1xf32>
    %77 = vector.broadcast %76 : vector<8x1xf32> to vector<8x8xf32>
    %78 = arith.subf %74, %77 : vector<8x8xf32>
    %79 = math.exp %78 : vector<8x8xf32>
    %cst_47 = arith.constant dense<0.000000e+00> : vector<8xf32>
    %80 = vector.multi_reduction <add>, %79, %cst_47 [1] : vector<8x8xf32> to vector<8xf32>
    %81 = vector.shape_cast %80 : vector<8xf32> to vector<8x1xf32>
    %82 = tpu.reciprocal %81 {approx = true} : vector<8x1xf32> -> vector<8x1xf32>
    %83 = vector.broadcast %82 : vector<8x1xf32> to vector<8x8xf32>
    %84 = arith.mulf %79, %83 : vector<8x8xf32>
    %85 = arith.truncf %84 : vector<8x8xf32> to vector<8x8xbf16>
    %cst_48 = arith.constant dense<0.000000e+00> : vector<8x8xf32>
    %86 = tpu.matmul %85, %71, %cst_48 {dimension_numbers = #tpu.dot_dimension_numbers<[1], [0], [0], [1], [0, 0, 1, 1], [], []>} : vector<8x8xbf16>, vector<8x8xbf16>, vector<8x8xf32> -> vector<8x8xf32>
    %87 = arith.truncf %86 : vector<8x8xf32> to vector<8x8xbf16>
    %c1 = arith.constant 1 : index
    %c0_49 = arith.constant 0 : index
    %c0_50 = arith.constant 0 : index
    %88 = vector.load %arg15[%c1, %c0_49, %c0_50] : memref<4x8x32xbf16, #tpu.memory_space<vmem>>, vector<1x8x32xbf16>
    %89 = vector.shape_cast %88 : vector<1x8x32xbf16> to vector<8x32xbf16>
    %cst_51 = arith.constant dense<0.000000e+00> : vector<8x32xf32>
    %90 = tpu.matmul %87, %89, %cst_51 {dimension_numbers = #tpu.dot_dimension_numbers<[1], [0], [0], [1], [0, 0, 1, 1], [], []>} : vector<8x8xbf16>, vector<8x32xbf16>, vector<8x32xf32> -> vector<8x32xf32>
    %91 = arith.addf %68, %90 : vector<8x32xf32>
    %92 = vector.extract_strided_slice %42 {offsets = [0, 16], sizes = [8, 8], strides = [1, 1]} : vector<8x32xbf16> to vector<8x8xbf16>
    %93 = vector.extract_strided_slice %43 {offsets = [0, 16], sizes = [8, 8], strides = [1, 1]} : vector<8x32xbf16> to vector<8x8xbf16>
    %94 = vector.extract_strided_slice %44 {offsets = [0, 16], sizes = [8, 8], strides = [1, 1]} : vector<8x32xbf16> to vector<8x8xbf16>
    %cst_52 = arith.constant dense<0.000000e+00> : vector<8x8xf32>
    %95 = tpu.matmul %92, %93, %cst_52 {dimension_numbers = #tpu.dot_dimension_numbers<[1], [1], [0], [0], [0, 0, 1, 0], [], []>} : vector<8x8xbf16>, vector<8x8xbf16>, vector<8x8xf32> -> vector<8x8xf32>
    %cst_53 = arith.constant 0.353553385 : f32
    %96 = vector.broadcast %cst_53 : f32 to vector<8x8xf32>
    %97 = arith.mulf %95, %96 : vector<8x8xf32>
    %cst_54 = arith.constant dense<0xFF800000> : vector<8xf32>
    %98 = vector.multi_reduction <maximumf>, %97, %cst_54 [1] : vector<8x8xf32> to vector<8xf32>
    %99 = vector.shape_cast %98 : vector<8xf32> to vector<8x1xf32>
    %100 = vector.broadcast %99 : vector<8x1xf32> to vector<8x8xf32>
    %101 = arith.subf %97, %100 : vector<8x8xf32>
    %102 = math.exp %101 : vector<8x8xf32>
    %cst_55 = arith.constant dense<0.000000e+00> : vector<8xf32>
    %103 = vector.multi_reduction <add>, %102, %cst_55 [1] : vector<8x8xf32> to vector<8xf32>
    %104 = vector.shape_cast %103 : vector<8xf32> to vector<8x1xf32>
    %105 = tpu.reciprocal %104 {approx = true} : vector<8x1xf32> -> vector<8x1xf32>
    %106 = vector.broadcast %105 : vector<8x1xf32> to vector<8x8xf32>
    %107 = arith.mulf %102, %106 : vector<8x8xf32>
    %108 = arith.truncf %107 : vector<8x8xf32> to vector<8x8xbf16>
    %cst_56 = arith.constant dense<0.000000e+00> : vector<8x8xf32>
    %109 = tpu.matmul %108, %94, %cst_56 {dimension_numbers = #tpu.dot_dimension_numbers<[1], [0], [0], [1], [0, 0, 1, 1], [], []>} : vector<8x8xbf16>, vector<8x8xbf16>, vector<8x8xf32> -> vector<8x8xf32>
    %110 = arith.truncf %109 : vector<8x8xf32> to vector<8x8xbf16>
    %c2 = arith.constant 2 : index
    %c0_57 = arith.constant 0 : index
    %c0_58 = arith.constant 0 : index
    %111 = vector.load %arg15[%c2, %c0_57, %c0_58] : memref<4x8x32xbf16, #tpu.memory_space<vmem>>, vector<1x8x32xbf16>
    %112 = vector.shape_cast %111 : vector<1x8x32xbf16> to vector<8x32xbf16>
    %cst_59 = arith.constant dense<0.000000e+00> : vector<8x32xf32>
    %113 = tpu.matmul %110, %112, %cst_59 {dimension_numbers = #tpu.dot_dimension_numbers<[1], [0], [0], [1], [0, 0, 1, 1], [], []>} : vector<8x8xbf16>, vector<8x32xbf16>, vector<8x32xf32> -> vector<8x32xf32>
    %114 = arith.addf %91, %113 : vector<8x32xf32>
    %115 = vector.extract_strided_slice %42 {offsets = [0, 24], sizes = [8, 8], strides = [1, 1]} : vector<8x32xbf16> to vector<8x8xbf16>
    %116 = vector.extract_strided_slice %43 {offsets = [0, 24], sizes = [8, 8], strides = [1, 1]} : vector<8x32xbf16> to vector<8x8xbf16>
    %117 = vector.extract_strided_slice %44 {offsets = [0, 24], sizes = [8, 8], strides = [1, 1]} : vector<8x32xbf16> to vector<8x8xbf16>
    %cst_60 = arith.constant dense<0.000000e+00> : vector<8x8xf32>
    %118 = tpu.matmul %115, %116, %cst_60 {dimension_numbers = #tpu.dot_dimension_numbers<[1], [1], [0], [0], [0, 0, 1, 0], [], []>} : vector<8x8xbf16>, vector<8x8xbf16>, vector<8x8xf32> -> vector<8x8xf32>
    %cst_61 = arith.constant 0.353553385 : f32
    %119 = vector.broadcast %cst_61 : f32 to vector<8x8xf32>
    %120 = arith.mulf %118, %119 : vector<8x8xf32>
    %cst_62 = arith.constant dense<0xFF800000> : vector<8xf32>
    %121 = vector.multi_reduction <maximumf>, %120, %cst_62 [1] : vector<8x8xf32> to vector<8xf32>
    %122 = vector.shape_cast %121 : vector<8xf32> to vector<8x1xf32>
    %123 = vector.broadcast %122 : vector<8x1xf32> to vector<8x8xf32>
    %124 = arith.subf %120, %123 : vector<8x8xf32>
    %125 = math.exp %124 : vector<8x8xf32>
    %cst_63 = arith.constant dense<0.000000e+00> : vector<8xf32>
    %126 = vector.multi_reduction <add>, %125, %cst_63 [1] : vector<8x8xf32> to vector<8xf32>
    %127 = vector.shape_cast %126 : vector<8xf32> to vector<8x1xf32>
    %128 = tpu.reciprocal %127 {approx = true} : vector<8x1xf32> -> vector<8x1xf32>
    %129 = vector.broadcast %128 : vector<8x1xf32> to vector<8x8xf32>
    %130 = arith.mulf %125, %129 : vector<8x8xf32>
    %131 = arith.truncf %130 : vector<8x8xf32> to vector<8x8xbf16>
    %cst_64 = arith.constant dense<0.000000e+00> : vector<8x8xf32>
    %132 = tpu.matmul %131, %117, %cst_64 {dimension_numbers = #tpu.dot_dimension_numbers<[1], [0], [0], [1], [0, 0, 1, 1], [], []>} : vector<8x8xbf16>, vector<8x8xbf16>, vector<8x8xf32> -> vector<8x8xf32>
    %133 = arith.truncf %132 : vector<8x8xf32> to vector<8x8xbf16>
    %c3 = arith.constant 3 : index
    %c0_65 = arith.constant 0 : index
    %c0_66 = arith.constant 0 : index
    %134 = vector.load %arg15[%c3, %c0_65, %c0_66] : memref<4x8x32xbf16, #tpu.memory_space<vmem>>, vector<1x8x32xbf16>
    %135 = vector.shape_cast %134 : vector<1x8x32xbf16> to vector<8x32xbf16>
    %cst_67 = arith.constant dense<0.000000e+00> : vector<8x32xf32>
    %136 = tpu.matmul %133, %135, %cst_67 {dimension_numbers = #tpu.dot_dimension_numbers<[1], [0], [0], [1], [0, 0, 1, 1], [], []>} : vector<8x8xbf16>, vector<8x32xbf16>, vector<8x32xf32> -> vector<8x32xf32>
    %137 = arith.addf %114, %136 : vector<8x32xf32>
    %c0_68 = arith.constant 0 : index
    %c0_69 = arith.constant 0 : index
    %138 = vector.load %arg16[%c0_68, %c0_69] : memref<1x32xf32, #tpu.memory_space<vmem>>, vector<1x32xf32>
    %139 = vector.broadcast %138 : vector<1x32xf32> to vector<8x32xf32>
    %140 = arith.addf %137, %139 : vector<8x32xf32>
    %141 = arith.addf %1, %140 : vector<8x32xf32>
    %cst_70 = arith.constant dense<0.000000e+00> : vector<8xf32>
    %142 = vector.multi_reduction <add>, %141, %cst_70 [1] : vector<8x32xf32> to vector<8xf32>
    %143 = vector.shape_cast %142 : vector<8xf32> to vector<8x1xf32>
    %cst_71 = arith.constant 3.200000e+01 : f32
    %144 = vector.broadcast %cst_71 : f32 to vector<8x1xf32>
    %145 = arith.divf %143, %144 : vector<8x1xf32>
    %146 = vector.broadcast %145 : vector<8x1xf32> to vector<8x32xf32>
    %147 = arith.subf %141, %146 : vector<8x32xf32>
    %148 = arith.mulf %147, %147 : vector<8x32xf32>
    %cst_72 = arith.constant dense<0.000000e+00> : vector<8xf32>
    %149 = vector.multi_reduction <add>, %148, %cst_72 [1] : vector<8x32xf32> to vector<8xf32>
    %150 = vector.shape_cast %149 : vector<8xf32> to vector<8x1xf32>
    %cst_73 = arith.constant 3.200000e+01 : f32
    %151 = vector.broadcast %cst_73 : f32 to vector<8x1xf32>
    %152 = arith.divf %150, %151 : vector<8x1xf32>
    %153 = vector.broadcast %145 : vector<8x1xf32> to vector<8x32xf32>
    %154 = arith.subf %141, %153 : vector<8x32xf32>
    %cst_74 = arith.constant 9.99999974E-6 : f32
    %155 = vector.broadcast %cst_74 : f32 to vector<8x1xf32>
    %156 = arith.addf %152, %155 : vector<8x1xf32>
    %157 = math.rsqrt %156 : vector<8x1xf32>
    %158 = vector.broadcast %157 : vector<8x1xf32> to vector<8x32xf32>
    %159 = arith.mulf %154, %158 : vector<8x32xf32>
    %c0_75 = arith.constant 0 : index
    %c0_76 = arith.constant 0 : index
    %160 = vector.load %arg17[%c0_75, %c0_76] : memref<1x32xf32, #tpu.memory_space<vmem>>, vector<1x32xf32>
    %161 = vector.broadcast %160 : vector<1x32xf32> to vector<8x32xf32>
    %162 = arith.mulf %159, %161 : vector<8x32xf32>
    %c0_77 = arith.constant 0 : index
    %c0_78 = arith.constant 0 : index
    %163 = vector.load %arg18[%c0_77, %c0_78] : memref<1x32xf32, #tpu.memory_space<vmem>>, vector<1x32xf32>
    %164 = vector.broadcast %163 : vector<1x32xf32> to vector<8x32xf32>
    %165 = arith.addf %162, %164 : vector<8x32xf32>
    %166 = arith.truncf %165 : vector<8x32xf32> to vector<8x32xbf16>
    %c0_79 = arith.constant 0 : index
    %c0_80 = arith.constant 0 : index
    %167 = vector.load %arg19[%c0_79, %c0_80] : memref<32x64xbf16, #tpu.memory_space<vmem>>, vector<32x64xbf16>
    %cst_81 = arith.constant dense<0.000000e+00> : vector<8x64xf32>
    %168 = tpu.matmul %166, %167, %cst_81 {dimension_numbers = #tpu.dot_dimension_numbers<[1], [0], [0], [1], [0, 0, 1, 1], [], []>} : vector<8x32xbf16>, vector<32x64xbf16>, vector<8x64xf32> -> vector<8x64xf32>
    %c0_82 = arith.constant 0 : index
    %c0_83 = arith.constant 0 : index
    %169 = vector.load %arg20[%c0_82, %c0_83] : memref<1x64xf32, #tpu.memory_space<vmem>>, vector<1x64xf32>
    %170 = vector.broadcast %169 : vector<1x64xf32> to vector<8x64xf32>
    %171 = arith.addf %168, %170 : vector<8x64xf32>
    %cst_84 = arith.constant 0.000000e+00 : f32
    %172 = vector.broadcast %cst_84 : f32 to vector<8x64xf32>
    %173 = arith.maximumf %171, %172 : vector<8x64xf32>
    %174 = arith.truncf %173 : vector<8x64xf32> to vector<8x64xbf16>
    %c0_85 = arith.constant 0 : index
    %c0_86 = arith.constant 0 : index
    %175 = vector.load %arg21[%c0_85, %c0_86] : memref<64x32xbf16, #tpu.memory_space<vmem>>, vector<64x32xbf16>
    %cst_87 = arith.constant dense<0.000000e+00> : vector<8x32xf32>
    %176 = tpu.matmul %174, %175, %cst_87 {dimension_numbers = #tpu.dot_dimension_numbers<[1], [0], [0], [1], [0, 0, 1, 1], [], []>} : vector<8x64xbf16>, vector<64x32xbf16>, vector<8x32xf32> -> vector<8x32xf32>
    %177 = arith.addf %165, %176 : vector<8x32xf32>
    %c0_88 = arith.constant 0 : index
    %c0_89 = arith.constant 0 : index
    %178 = vector.load %arg22[%c0_88, %c0_89] : memref<1x32xf32, #tpu.memory_space<vmem>>, vector<1x32xf32>
    %179 = vector.broadcast %178 : vector<1x32xf32> to vector<8x32xf32>
    %180 = arith.addf %177, %179 : vector<8x32xf32>
    %cst_90 = arith.constant dense<0.000000e+00> : vector<8xf32>
    %181 = vector.multi_reduction <add>, %180, %cst_90 [1] : vector<8x32xf32> to vector<8xf32>
    %182 = vector.shape_cast %181 : vector<8xf32> to vector<8x1xf32>
    %cst_91 = arith.constant 3.200000e+01 : f32
    %183 = vector.broadcast %cst_91 : f32 to vector<8x1xf32>
    %184 = arith.divf %182, %183 : vector<8x1xf32>
    %185 = vector.broadcast %184 : vector<8x1xf32> to vector<8x32xf32>
    %186 = arith.subf %180, %185 : vector<8x32xf32>
    %187 = arith.mulf %186, %186 : vector<8x32xf32>
    %cst_92 = arith.constant dense<0.000000e+00> : vector<8xf32>
    %188 = vector.multi_reduction <add>, %187, %cst_92 [1] : vector<8x32xf32> to vector<8xf32>
    %189 = vector.shape_cast %188 : vector<8xf32> to vector<8x1xf32>
    %cst_93 = arith.constant 3.200000e+01 : f32
    %190 = vector.broadcast %cst_93 : f32 to vector<8x1xf32>
    %191 = arith.divf %189, %190 : vector<8x1xf32>
    %192 = vector.broadcast %184 : vector<8x1xf32> to vector<8x32xf32>
    %193 = arith.subf %180, %192 : vector<8x32xf32>
    %cst_94 = arith.constant 9.99999974E-6 : f32
    %194 = vector.broadcast %cst_94 : f32 to vector<8x1xf32>
    %195 = arith.addf %191, %194 : vector<8x1xf32>
    %196 = math.rsqrt %195 : vector<8x1xf32>
    %197 = vector.broadcast %196 : vector<8x1xf32> to vector<8x32xf32>
    %198 = arith.mulf %193, %197 : vector<8x32xf32>
    %c0_95 = arith.constant 0 : index
    %c0_96 = arith.constant 0 : index
    %199 = vector.load %arg23[%c0_95, %c0_96] : memref<1x32xf32, #tpu.memory_space<vmem>>, vector<1x32xf32>
    %200 = vector.broadcast %199 : vector<1x32xf32> to vector<8x32xf32>
    %201 = arith.mulf %198, %200 : vector<8x32xf32>
    %c0_97 = arith.constant 0 : index
    %c0_98 = arith.constant 0 : index
    %202 = vector.load %arg24[%c0_97, %c0_98] : memref<1x32xf32, #tpu.memory_space<vmem>>, vector<1x32xf32>
    %203 = vector.broadcast %202 : vector<1x32xf32> to vector<8x32xf32>
    %204 = arith.addf %201, %203 : vector<8x32xf32>
    %c0_99 = arith.constant 0 : index
    %c0_100 = arith.constant 0 : index
    %c0_101 = arith.constant 0 : index
    %205 = vector.load %arg25[%c0_99, %c0_100, %c0_101] : memref<1x8x32xf32, #tpu.memory_space<vmem>>, vector<1x8x32xf32>
    %206 = vector.shape_cast %205 : vector<1x8x32xf32> to vector<8x32xf32>
    %207 = vector.shape_cast %204 : vector<8x32xf32> to vector<1x8x32xf32>
    tpu.vector_store %arg25[%c0_99, %c0_100, %c0_101], %207 {strides = array<i32>} : memref<1x8x32xf32, #tpu.memory_space<vmem>>, vector<1x8x32xf32>,
    return
  }
  func.func @transform_0(%arg0: i32) -> (i32, i32, i32) {
    %c0_i32 = arith.constant 0 : i32
    %c0_i32_0 = arith.constant 0 : i32
    %c0_i32_1 = arith.constant 0 : i32
    return %arg0, %c0_i32, %c0_i32_0 : i32, i32, i32
  }
  func.func @transform_1(%arg0: i32) -> (i32, i32, i32) {
    %c0_i32 = arith.constant 0 : i32
    %c0_i32_0 = arith.constant 0 : i32
    %c0_i32_1 = arith.constant 0 : i32
    return %arg0, %c0_i32, %c0_i32_0 : i32, i32, i32
  }
  func.func @transform_2(%arg0: i32) -> (i32, i32) {
    %c0_i32 = arith.constant 0 : i32
    %c0_i32_0 = arith.constant 0 : i32
    %c0_i32_1 = arith.constant 0 : i32
    return %c0_i32, %c0_i32_0 : i32, i32
  }
  func.func @transform_3(%arg0: i32) -> (i32, i32) {
    %c0_i32 = arith.constant 0 : i32
    %c0_i32_0 = arith.constant 0 : i32
    %c0_i32_1 = arith.constant 0 : i32
    return %c0_i32, %c0_i32_0 : i32, i32
  }
  func.func @transform_4(%arg0: i32) -> (i32, i32) {
    %c0_i32 = arith.constant 0 : i32
    %c0_i32_0 = arith.constant 0 : i32
    %c0_i32_1 = arith.constant 0 : i32
    return %c0_i32, %c0_i32_0 : i32, i32
  }
  func.func @transform_5(%arg0: i32) -> (i32, i32) {
    %c0_i32 = arith.constant 0 : i32
    %c0_i32_0 = arith.constant 0 : i32
    %c0_i32_1 = arith.constant 0 : i32
    return %c0_i32, %c0_i32_0 : i32, i32
  }
  func.func @transform_6(%arg0: i32) -> (i32, i32) {
    %c0_i32 = arith.constant 0 : i32
    %c0_i32_0 = arith.constant 0 : i32
    %c0_i32_1 = arith.constant 0 : i32
    return %c0_i32, %c0_i32_0 : i32, i32
  }
  func.func @transform_7(%arg0: i32) -> (i32, i32) {
    %c0_i32 = arith.constant 0 : i32
    %c0_i32_0 = arith.constant 0 : i32
    %c0_i32_1 = arith.constant 0 : i32
    return %c0_i32, %c0_i32_0 : i32, i32
  }
  func.func @transform_8(%arg0: i32) -> (i32, i32) {
    %c0_i32 = arith.constant 0 : i32
    %c0_i32_0 = arith.constant 0 : i32
    %c0_i32_1 = arith.constant 0 : i32
    return %c0_i32, %c0_i32_0 : i32, i32
  }
  func.func @transform_9(%arg0: i32) -> (i32, i32) {
    %c0_i32 = arith.constant 0 : i32
    %c0_i32_0 = arith.constant 0 : i32
    %c0_i32_1 = arith.constant 0 : i32
    return %c0_i32, %c0_i32_0 : i32, i32
  }
  func.func @transform_10(%arg0: i32) -> (i32, i32) {
    %c0_i32 = arith.constant 0 : i32
    %c0_i32_0 = arith.constant 0 : i32
    %c0_i32_1 = arith.constant 0 : i32
    return %c0_i32, %c0_i32_0 : i32, i32
  }
  func.func @transform_11(%arg0: i32) -> (i32, i32) {
    %c0_i32 = arith.constant 0 : i32
    %c0_i32_0 = arith.constant 0 : i32
    %c0_i32_1 = arith.constant 0 : i32
    return %c0_i32, %c0_i32_0 : i32, i32
  }
  func.func @transform_12(%arg0: i32) -> (i32, i32) {
    %c0_i32 = arith.constant 0 : i32
    %c0_i32_0 = arith.constant 0 : i32
    %c0_i32_1 = arith.constant 0 : i32
    return %c0_i32, %c0_i32_0 : i32, i32
  }
  func.func @transform_13(%arg0: i32) -> (i32, i32) {
    %c0_i32 = arith.constant 0 : i32
    %c0_i32_0 = arith.constant 0 : i32
    %c0_i32_1 = arith.constant 0 : i32
    return %c0_i32, %c0_i32_0 : i32, i32
  }
  func.func @transform_14(%arg0: i32) -> (i32, i32, i32) {
    %c0_i32 = arith.constant 0 : i32
    %c0_i32_0 = arith.constant 0 : i32
    %c0_i32_1 = arith.constant 0 : i32
    %c0_i32_2 = arith.constant 0 : i32
    return %c0_i32, %c0_i32_0, %c0_i32_1 : i32, i32, i32
  }
  func.func @transform_15(%arg0: i32) -> (i32, i32) {
    %c0_i32 = arith.constant 0 : i32
    %c0_i32_0 = arith.constant 0 : i32
    %c0_i32_1 = arith.constant 0 : i32
    return %c0_i32, %c0_i32_0 : i32, i32
  }
  func.func @transform_16(%arg0: i32) -> (i32, i32) {
    %c0_i32 = arith.constant 0 : i32
    %c0_i32_0 = arith.constant 0 : i32
    %c0_i32_1 = arith.constant 0 : i32
    return %c0_i32, %c0_i32_0 : i32, i32
  }
  func.func @transform_17(%arg0: i32) -> (i32, i32) {
    %c0_i32 = arith.constant 0 : i32
    %c0_i32_0 = arith.constant 0 : i32
    %c0_i32_1 = arith.constant 0 : i32
    return %c0_i32, %c0_i32_0 : i32, i32
  }
  func.func @transform_18(%arg0: i32) -> (i32, i32) {
    %c0_i32 = arith.constant 0 : i32
    %c0_i32_0 = arith.constant 0 : i32
    %c0_i32_1 = arith.constant 0 : i32
    return %c0_i32, %c0_i32_0 : i32, i32
  }
  func.func @transform_19(%arg0: i32) -> (i32, i32) {
    %c0_i32 = arith.constant 0 : i32
    %c0_i32_0 = arith.constant 0 : i32
    %c0_i32_1 = arith.constant 0 : i32
    return %c0_i32, %c0_i32_0 : i32, i32
  }
  func.func @transform_20(%arg0: i32) -> (i32, i32) {
    %c0_i32 = arith.constant 0 : i32
    %c0_i32_0 = arith.constant 0 : i32
    %c0_i32_1 = arith.constant 0 : i32
    return %c0_i32, %c0_i32_0 : i32, i32
  }
  func.func @transform_21(%arg0: i32) -> (i32, i32) {
    %c0_i32 = arith.constant 0 : i32
    %c0_i32_0 = arith.constant 0 : i32
    %c0_i32_1 = arith.constant 0 : i32
    return %c0_i32, %c0_i32_0 : i32, i32
  }
  func.func @transform_22(%arg0: i32) -> (i32, i32) {
    %c0_i32 = arith.constant 0 : i32
    %c0_i32_0 = arith.constant 0 : i32
    %c0_i32_1 = arith.constant 0 : i32
    return %c0_i32, %c0_i32_0 : i32, i32
  }
  func.func @transform_23(%arg0: i32) -> (i32, i32) {
    %c0_i32 = arith.constant 0 : i32
    %c0_i32_0 = arith.constant 0 : i32
    %c0_i32_1 = arith.constant 0 : i32
    return %c0_i32, %c0_i32_0 : i32, i32
  }
  func.func @transform_24(%arg0: i32) -> (i32, i32, i32) {
    %c0_i32 = arith.constant 0 : i32
    %c0_i32_0 = arith.constant 0 : i32
    %c0_i32_1 = arith.constant 0 : i32
    return %arg0, %c0_i32, %c0_i32_0 : i32, i32, i32
  }
}

</mosaic_0001>

<bundles_post_ra>
// kernel: tpu_custom_call.1
= control target key start
LH: loop header
LB: loop body
LE: loop exit
PB: predicated region body
PF: predicated region fallthrough
CT: control target
= control target key end

     0   :  { %s3614_s0 = inlined_call_operand.vmem [shape: f32[2,8,32], index: 0, kind: input, shape index: {}]   ;;  %s3615_s1 = inlined_call_operand.vmem [shape: f32[2,8,3], index: 1, kind: input, shape index: {}]   ;;  %s3616_s2 = inlined_call_operand.hbm [shape: bf16[3,32], index: 2, kind: input, shape index: {}]   ;;  %s3617_s3 = inlined_call_operand.hbm [shape: f32[1,32], index: 3, kind: input, shape index: {}]   ;;  %s3618_s4 = inlined_call_operand.hbm [shape: f32[1,32], index: 4, kind: input, shape index: {}]   ;;  %s3619_s5 = inlined_call_operand.hbm [shape: f32[1,32], index: 5, kind: input, shape index: {}]   ;;  %s3620_s6 = inlined_call_operand.vmem [shape: bf16[32,32], index: 6, kind: input, shape index: {}]   ;;  %s3621_s7 = inlined_call_operand.hbm [shape: f32[1,32], index: 7, kind: input, shape index: {}]   ;;  %s3622_s8 = inlined_call_operand.vmem [shape: bf16[32,32], index: 8, kind: input, shape index: {}]   ;;  %s3623_s9 = inlined_call_operand.vmem [shape: f32[1,32], index: 9, kind: input, shape index: {}]   ;;  %s3624_s10 = inlined_call_operand.vmem [shape: bf16[32,32], index: 10, kind: input, shape index: {}]   ;;  %s3625_s11 = inlined_call_operand.vmem [shape: f32[1,32], index: 11, kind: input, shape index: {}]   ;;  %s3626_s12 = inlined_call_operand.vmem [shape: bf16[32,32], index: 12, kind: input, shape index: {}]   ;;  %s3627_s13 = inlined_call_operand.hbm [shape: f32[1,32], index: 13, kind: input, shape index: {}]   ;;  %s3628_s14 = inlined_call_operand.vmem [shape: bf16[4,8,32], index: 14, kind: input, shape index: {}]   ;;  %s3629_s15 = inlined_call_operand.hbm [shape: f32[1,32], index: 15, kind: input, shape index: {}]   ;;  %s3630_s16 = inlined_call_operand.hbm [shape: f32[1,32], index: 16, kind: input, shape index: {}]   ;;  %s3631_s17 = inlined_call_operand.vmem [shape: f32[1,32], index: 17, kind: input, shape index: {}]   ;;  %s3632_s18 = inlined_call_operand.vmem [shape: bf16[32,64], index: 18, kind: input, shape index: {}]   ;;  %s3633_s19 = inlined_call_operand.vmem [shape: f32[1,64], index: 19, kind: input, shape index: {}]   ;;  %s3634_s20 = inlined_call_operand.vmem [shape: bf16[64,32], index: 20, kind: input, shape index: {}]   ;;  %s3635_s21 = inlined_call_operand.vmem [shape: f32[1,32], index: 21, kind: input, shape index: {}]   ;;  %s3636_s22 = inlined_call_operand.vmem [shape: f32[1,32], index: 22, kind: input, shape index: {}]   ;;  %s3637_s23 = inlined_call_operand.vmem [shape: f32[1,32], index: 23, kind: input, shape index: {}]   ;;  %s3638_s24 = inlined_call_operand.hbm [shape: f32[2,8,32], index: 24, kind: output, shape index: {}]  }
   0x1   :  { %3663 = sst [smem:[#allocation31_spill]] %s3614_s0 }
   0x2   :  { %3664 = sst [smem:[#allocation32_spill]] %s3615_s1 }
   0x3   :  { %3665 = sst [smem:[#allocation33_spill]] %s3616_s2 }
   0x4   :  { %3666 = sst [smem:[#allocation34_spill]] %s3617_s3 }
   0x5   :  { %3667 = sst [smem:[#allocation35_spill]] %s3618_s4 }
   0x6   :  { %3668 = sst [smem:[#allocation36_spill]] %s3619_s5 }
   0x7   :  { %3669 = sst [smem:[#allocation37_spill]] %s3620_s6 }
   0x8   :  { %3670 = sst [smem:[#allocation38_spill]] %s3621_s7 }
   0x9   :  { %3671 = sst [smem:[#allocation39_spill]] %s3622_s8 }
   0xa   :  { %3672 = sst [smem:[#allocation40_spill]] %s3623_s9 }
   0xb   :  { %3673 = sst [smem:[#allocation41_spill]] %s3627_s13 }
   0xc   :  { %3674 = sst [smem:[#allocation42_spill]] %s3636_s22 }
   0xd   :  { %3675 = sst [smem:[#allocation43_spill]] %s3637_s23 }
   0xe   :  { %3676 = sst [smem:[#allocation44_spill]] %s3638_s24 }
   0xf   :  { %29 = vsyncpa [#allocation3], 0 }
  0x10   :  { %30 = vsyncpa [#allocation6], 0 }
  0x11   :  { %31 = vsyncpa [#allocation9], 0 }
  0x12   :  { %32 = vsyncpa [#allocation12], 0 }
  0x13   :  { %33 = vsyncpa [#allocation15], 0 }
  0x14   :  { %34 = vsyncpa [#allocation4], 0 }
  0x15   :  { %36 = vsyncpa [#allocation4 + $0x1], 0  ;;  %s3088_s5 = smov 0   ;;  %s3090_s26 = smov 0  }
  0x16   :  { %s3092_s27 = smov 0   ;;  %s3094_s28 = smov 0  }
  0x17 LB: > { %3677 = sst [smem:[#allocation23_spill]] %s2934_s5  ;;  %s3109_s6 = sadd.s32 4294967295, %s2946_s28   ;;  %s2946_s28 = sphi %s3094_s28, %s3723_s28   ;;  %s2942_s27 = sphi %s3092_s27, %s3726_s27   ;;  %s2938_s26 = sphi %s3090_s26, %s3725_s26   ;;  %s2934_s5 = sphi %s3088_s5, %s3724_s5  }
  0x18   : > { %3678 = sst [smem:[#allocation24_spill]] %s2938_s26  ;;  %s2227_s2 = sadd.s32 4294967294, %s2946_s28  }
  0x19   : > { %3679 = sst [smem:[#allocation25_spill]] %s2942_s27  ;;  %s3113_s29 = sadd.s32 1, %s2946_s28  }
  0x1a   : > { %3680 = sst [smem:[#allocation26_spill]] %s2946_s28  ;;  %s563_s0 = sadd.s32 1, %s2942_s27 }
  0x1b   : > { %3681 = sst [smem:[#allocation27_spill]] %s3113_s29  ;;  %s560_s7 = ssub.s32 %s2946_s28, %s3113_s29 }
  0x1c   : > { %p573_p0 = scmp.ne.s32.totalorder %s2942_s27, %s2938_s26  ;;  %p561_p1 = scmp.eq.s32.totalorder %s560_s7, 0 }
  0x1d   : > { %p574_p2 = scmp.eq.s32.totalorder %s3109_s6, 1  ;;  %p579_p3 = scmp.ne.s32.totalorder %s2938_s26, %s2934_s5 }
  0x1e   : > { %p580_p4 = scmp.eq.s32.totalorder %s2227_s2, 1  ;;  %p2228_p7 = scmp.ge.s32.totalorder %s2946_s28, 1 }
  0x1f   : > { %s3124_s30 = scalar_select %p561_p1, %s2942_s27, %s563_s0  }
  0x20   : > { %p3126_p5 = por %p574_p2, %p573_p0  ;;  %p3130_p6 = por %p580_p4, %p579_p3 }
  0x21   : > { %3682 = sst [smem:[#allocation28_spill]] %s3124_s30  ;;  %p587_p8 = scmp.lt.s32.totalorder %s2946_s28, 3 }
  0x22   : > { %s3683_s3 = scalar_select %p3126_p5, 1, 0 }
  0x23   : > { %s3685_s25 = scalar_select %p3130_p6, 1, 0 }
  0x24   : > { %3684 = sst [smem:[#allocation29_spill]] %s3683_s3  ;;  %p3653_p9 = scmp.eq.s32.totalorder %s3109_s6, 0 }
  0x25   : > { %3686 = sst [smem:[#allocation30_spill]] %s3685_s25  ;;  %p3137_p10 = pnand %p2228_p7, %p587_p8 }
  0x26   : > { %s2948_s4 = smov [#allocation5]   ;;  %s2949_s2 = smov [#allocation8]  }
  0x27   : > { %s3687_s8 = scalar_select %p3137_p10, 1, 0 }
  0x28   : > { %s611_s1 = sshll.u32 %s2948_s4, 4  ;;  %p2514_p11 = pneg %p3137_p10  ;;  %s612_s1 = int_to_ptr.vmem [resolvable:$true] %s611_s1 }
  0x29   : > { %s633_s0 = sshll.u32 %s2949_s2, 4  ;;  %s2950_s30 = smov [#allocation11]   ;;  %s3149_s0 = int_to_ptr.vmem [resolvable:$true] %s633_s0 }
  0x2a   : > { %p3145_p12 = pnand %p3653_p9, %p2514_p11  ;;  %s673_s27 = sshll.u32 %s2950_s30, 4  ;;  %s3151_s27 = int_to_ptr.vmem [resolvable:$true] %s673_s27 }
  0x2b   : > { %s3689_s4 = sld [smem:[#allocation34_spill]] }
  0x2c   : > { %p3161_p0 = pneg %p3145_p12 }
  0x31   : > { %s2640_s5 = scalar_lea.hbm %s3689_s4, 16 }
  0x32   : > { %p2641_p13 = scmp.ne.s32.totalorder %s3689_s4, %s2640_s5  ;;  %p2647_p3 = scmp.lt.u32.totalorder %s2640_s5, %s3689_s4 }
  0x34   : > { %p2643_p1 = pnand %p3161_p0, %p2641_p13 }
  0x36   : > { %p2644_p2 = pneg %p2643_p1 }
  0x38   : > { %p2649_p4 = pnand %p2647_p3, %p2644_p2 }
  0x3a   : > { %2652 = shalt.err (!%p2649_p4)
}
  0x3b   : > { %s2653_s29 = scalar_lea.vmem %s612_s1, 16  ;;  %s2660_s24 = scalar_lea.vmem %s612_s1, 32 }
  0x3c   : > { %p2654_p7 = scmp.ne.s32.totalorder %s612_s1, %s2653_s29  ;;  %p2661_p9 = scmp.lt.s32.totalorder %s612_s1, %s612_s1 }
  0x3d   : > { %p2662_p6 = scmp.lt.s32.totalorder %s2660_s24, %s2653_s29 }
  0x3e   : > { %p2656_p8 = pnand %p2654_p7, %p3161_p0 }
  0x3f   : > { %p2663_p5 = por %p2662_p6, %p2661_p9 }
  0x40   : > { %p2657_p11 = pneg %p2656_p8 }
  0x42   : > { %p2664_p10 = pnand %p2663_p5, %p2657_p11 }
  0x44   : > { %2667 = shalt.err (!%p2664_p10)
}
  0x45   : > { %2520 = dma.hbm_to_vmem [thread:$0]  (!%p3145_p12), %s3689_s4, 16, %s612_s1, [#allocation6]  }
  0x46   : > { %s3691_s30 = sld [smem:[#allocation36_spill]] }
  0x4c   : > { %s2668_s22 = scalar_lea.hbm %s3691_s30, 16 }
  0x4d   : > { %p2669_p13 = scmp.ne.s32.totalorder %s3691_s30, %s2668_s22  ;;  %p2675_p5 = scmp.lt.u32.totalorder %s2668_s22, %s3691_s30 }
  0x4f   : > { %p2671_p1 = pnand %p2669_p13, %p3161_p0 }
  0x51   : > { %p2672_p6 = pneg %p2671_p1 }
  0x53   : > { %p2677_p9 = pnand %p2675_p5, %p2672_p6 }
  0x55   : > { %2680 = shalt.err (!%p2677_p9)
}
  0x56   : > { %s2681_s1 = scalar_lea.vmem %s3149_s0, 16  ;;  %s2688_s26 = scalar_lea.vmem %s3149_s0, 32 }
  0x57   : > { %p2682_p10 = scmp.ne.s32.totalorder %s3149_s0, %s2681_s1  ;;  %p2689_p4 = scmp.lt.s32.totalorder %s3149_s0, %s3149_s0 }
  0x58   : > { %p2690_p7 = scmp.lt.s32.totalorder %s2688_s26, %s2681_s1 }
  0x59   : > { %p2684_p2 = pnand %p2682_p10, %p3161_p0 }
  0x5a   : > { %p2691_p8 = por %p2690_p7, %p2689_p4 }
  0x5b   : > { %p2685_p3 = pneg %p2684_p2 }
  0x5d   : > { %p2692_p11 = pnand %p2691_p8, %p2685_p3 }
  0x5f   : > { %2695 = shalt.err (!%p2692_p11)
}
  0x60   : > { %2526 = dma.hbm_to_vmem [thread:$0]  (!%p3145_p12), %s3691_s30, 16, %s3149_s0, [#allocation9]  }
  0x61   : > { %s3692_s13 = sld [smem:[#allocation41_spill]] }
  0x67   : > { %s2696_s23 = scalar_lea.hbm %s3692_s13, 16 }
  0x68   : > { %p2697_p13 = scmp.ne.s32.totalorder %s3692_s13, %s2696_s23  ;;  %p2703_p5 = scmp.lt.u32.totalorder %s2696_s23, %s3692_s13 }
  0x6a   : > { %p2699_p1 = pnand %p2697_p13, %p3161_p0 }
  0x6c   : > { %p2700_p6 = pneg %p2699_p1 }
  0x6e   : > { %p2705_p9 = pnand %p2703_p5, %p2700_p6 }
  0x70   : > { %2708 = shalt.err (!%p2705_p9)
}
  0x71   : > { %s2709_s0 = scalar_lea.vmem %s3151_s27, 16  ;;  %s2716_s26 = scalar_lea.vmem %s3151_s27, 32 }
  0x72   : > { %p2710_p10 = scmp.ne.s32.totalorder %s3151_s27, %s2709_s0  ;;  %p2717_p4 = scmp.lt.s32.totalorder %s3151_s27, %s3151_s27 }
  0x73   : > { %p2718_p7 = scmp.lt.s32.totalorder %s2716_s26, %s2709_s0 }
  0x74   : > { %p2712_p2 = pnand %p2710_p10, %p3161_p0 }
  0x75   : > { %p2719_p8 = por %p2718_p7, %p2717_p4 }
  0x76   : > { %p2713_p3 = pneg %p2712_p2 }
  0x78   : > { %p2720_p11 = pnand %p2719_p8, %p2713_p3 }
  0x7a   : > { %2723 = shalt.err (!%p2720_p11)
}
  0x7b   : > { %2532 = dma.hbm_to_vmem [thread:$0]  (!%p3145_p12), %s3692_s13, 16, %s3151_s27, [#allocation12]  }
  0x7c   : > { %s2951_s28 = smov [#allocation2]   ;;  %s2952_s23 = smov [#allocation7]  }
  0x7d   : > { %s600_s25 = sshll.u32 %s2951_s28, 4  ;;  %s622_s5 = sshll.u32 %s2952_s23, 4  ;;  %s601_s25 = int_to_ptr.vmem [resolvable:$true] %s600_s25  ;;  %s623_s5 = int_to_ptr.vmem [resolvable:$true] %s622_s5 }
  0x7e   : > { %s3693_s1 = sld [smem:[#allocation33_spill]] }
  0x84   : > { %s2724_s0 = scalar_lea.hbm %s3693_s1, 32 }
  0x85   : > { %p2725_p13 = scmp.ne.s32.totalorder %s3693_s1, %s2724_s0  ;;  %p2731_p5 = scmp.lt.u32.totalorder %s2724_s0, %s3693_s1 }
  0x87   : > { %p2727_p1 = pnand %p2725_p13, %p3161_p0 }
  0x89   : > { %p2728_p6 = pneg %p2727_p1 }
  0x8b   : > { %p2733_p9 = pnand %p2731_p5, %p2728_p6 }
  0x8d   : > { %2736 = shalt.err (!%p2733_p9)
}
  0x8e   : > { %s2737_s27 = scalar_lea.vmem %s601_s25, 32  ;;  %p2745_p4 = scmp.lt.s32.totalorder %s601_s25, %s601_s25 }
  0x8f   : > { %p2738_p10 = scmp.ne.s32.totalorder %s601_s25, %s2737_s27  ;;  %p2746_p7 = scmp.lt.s32.totalorder %s2737_s27, %s2737_s27 }
  0x91   : > { %p2740_p2 = pnand %p2738_p10, %p3161_p0  ;;  %p2747_p8 = por %p2746_p7, %p2745_p4 }
  0x93   : > { %p2741_p3 = pneg %p2740_p2 }
  0x95   : > { %p2748_p11 = pnand %p2747_p8, %p2741_p3 }
  0x97   : > { %2751 = shalt.err (!%p2748_p11)
}
  0x98   : > { %2517 = dma.hbm_to_vmem [thread:$0]  (!%p3145_p12), %s3693_s1, 32, %s601_s25, [#allocation3]  }
  0x99   : > { %s3694_s23 = sld [smem:[#allocation35_spill]] }
  0x9f   : > { %s2752_s29 = scalar_lea.hbm %s3694_s23, 16 }
  0xa0   : > { %p2753_p13 = scmp.ne.s32.totalorder %s3694_s23, %s2752_s29  ;;  %p2759_p5 = scmp.lt.u32.totalorder %s2752_s29, %s3694_s23 }
  0xa2   : > { %p2755_p1 = pnand %p2753_p13, %p3161_p0 }
  0xa4   : > { %p2756_p6 = pneg %p2755_p1 }
  0xa6   : > { %p2761_p9 = pnand %p2759_p5, %p2756_p6 }
  0xa8   : > { %2764 = shalt.err (!%p2761_p9)
}
  0xa9   : > { %s2765_s27 = scalar_lea.vmem %s623_s5, 16  ;;  %s2772_s25 = scalar_lea.vmem %s623_s5, 32 }
  0xaa   : > { %p2766_p10 = scmp.ne.s32.totalorder %s623_s5, %s2765_s27  ;;  %p2773_p4 = scmp.lt.s32.totalorder %s623_s5, %s623_s5 }
  0xab   : > { %p2774_p7 = scmp.lt.s32.totalorder %s2772_s25, %s2765_s27 }
  0xac   : > { %p2768_p2 = pnand %p2766_p10, %p3161_p0 }
  0xad   : > { %p2775_p8 = por %p2774_p7, %p2773_p4 }
  0xae   : > { %p2769_p3 = pneg %p2768_p2 }
  0xb0   : > { %p2776_p11 = pnand %p2775_p8, %p2769_p3 }
  0xb2   : > { %2779 = shalt.err (!%p2776_p11)
}
  0xb3   : > { %2523 = dma.hbm_to_vmem [thread:$0]  (!%p3145_p12), %s3694_s23, 16, %s623_s5, [#allocation6]  }
  0xb4   : > { %s2953_s30 = smov [#allocation10]   ;;  %s2954_s29 = smov [#allocation13]  }
  0xb5   : > { %s647_s28 = sshll.u32 %s2953_s30, 4  ;;  %s687_s24 = sshll.u32 %s2954_s29, 4  ;;  %s648_s28 = int_to_ptr.vmem [resolvable:$true] %s647_s28  ;;  %s688_s24 = int_to_ptr.vmem [resolvable:$true] %s687_s24 }
  0xb6   : > { %s3695_s22 = sld [smem:[#allocation38_spill]] }
  0xbc   : > { %s2780_s1 = scalar_lea.hbm %s3695_s22, 16 }
  0xbd   : > { %p2781_p13 = scmp.ne.s32.totalorder %s3695_s22, %s2780_s1  ;;  %p2787_p5 = scmp.lt.u32.totalorder %s2780_s1, %s3695_s22 }
  0xbf   : > { %p2783_p1 = pnand %p2781_p13, %p3161_p0 }
  0xc1   : > { %p2784_p6 = pneg %p2783_p1 }
  0xc3   : > { %p2789_p9 = pnand %p2787_p5, %p2784_p6 }
  0xc5   : > { %2792 = shalt.err (!%p2789_p9)
}
  0xc6   : > { %s2793_s5 = scalar_lea.vmem %s648_s28, 16  ;;  %s2800_s3 = scalar_lea.vmem %s648_s28, 32 }
  0xc7   : > { %p2794_p10 = scmp.ne.s32.totalorder %s648_s28, %s2793_s5  ;;  %p2801_p4 = scmp.lt.s32.totalorder %s648_s28, %s648_s28 }
  0xc8   : > { %p2802_p7 = scmp.lt.s32.totalorder %s2800_s3, %s2793_s5 }
  0xc9   : > { %p2796_p2 = pnand %p2794_p10, %p3161_p0 }
  0xca   : > { %p2803_p8 = por %p2802_p7, %p2801_p4 }
  0xcb   : > { %p2797_p3 = pneg %p2796_p2 }
  0xcd   : > { %p2804_p11 = pnand %p2803_p8, %p2797_p3 }
  0xcf   : > { %2807 = shalt.err (!%p2804_p11)
}
  0xd0   : > { %2529 = dma.hbm_to_vmem [thread:$0]  (!%p3145_p12), %s3695_s22, 16, %s648_s28, [#allocation9]  }
  0xd1   : > { %s2808_s0 = scalar_lea.hbm %s3629_s15, 16 }
  0xd2   : > { %p2809_p13 = scmp.ne.s32.totalorder %s3629_s15, %s2808_s0  ;;  %p2815_p5 = scmp.lt.u32.totalorder %s2808_s0, %s3629_s15 }
  0xd4   : > { %p2811_p1 = pnand %p2809_p13, %p3161_p0 }
  0xd6   : > { %p2812_p6 = pneg %p2811_p1 }
  0xd8   : > { %p2817_p9 = pnand %p2815_p5, %p2812_p6 }
  0xda   : > { %2820 = shalt.err (!%p2817_p9)
}
  0xdb   : > { %s2821_s5 = scalar_lea.vmem %s688_s24, 16  ;;  %s2828_s28 = scalar_lea.vmem %s688_s24, 32 }
  0xdc   : > { %p2822_p10 = scmp.ne.s32.totalorder %s688_s24, %s2821_s5  ;;  %p2829_p4 = scmp.lt.s32.totalorder %s688_s24, %s688_s24 }
  0xdd   : > { %p2830_p7 = scmp.lt.s32.totalorder %s2828_s28, %s2821_s5 }
  0xde   : > { %p2824_p2 = pnand %p2822_p10, %p3161_p0 }
  0xdf   : > { %p2831_p8 = por %p2830_p7, %p2829_p4 }
  0xe0   : > { %p2825_p3 = pneg %p2824_p2 }
  0xe2   : > { %p2832_p11 = pnand %p2831_p8, %p2825_p3 }
  0xe4   : > { %2835 = shalt.err (!%p2832_p11)
}
  0xe5   : > { %2535 = dma.hbm_to_vmem [thread:$0]  (!%p3145_p12), %s3629_s15, 16, %s688_s24, [#allocation12]  }
  0xe6   : > { %s2955_s29 = smov [#allocation14]   ;;  %s2836_s26 = scalar_lea.hbm %s3630_s16, 16 }
  0xe7   : > { %s698_s13 = sshll.u32 %s2955_s29, 4  ;;  %p2837_p13 = scmp.ne.s32.totalorder %s3630_s16, %s2836_s26  ;;  %s699_s13 = int_to_ptr.vmem [resolvable:$true] %s698_s13 }
  0xe8   : > { %p2843_p5 = scmp.lt.u32.totalorder %s2836_s26, %s3630_s16 }
  0xe9   : > { %p2839_p1 = pnand %p2837_p13, %p3161_p0 }
  0xeb   : > { %p2840_p6 = pneg %p2839_p1 }
  0xed   : > { %p2845_p9 = pnand %p2843_p5, %p2840_p6 }
  0xef   : > { %2848 = shalt.err (!%p2845_p9)
}
  0xf0   : > { %s2849_s24 = scalar_lea.vmem %s699_s13, 16  ;;  %s2856_s28 = scalar_lea.vmem %s699_s13, 32 }
  0xf1   : > { %p2850_p10 = scmp.ne.s32.totalorder %s699_s13, %s2849_s24  ;;  %p2857_p4 = scmp.lt.s32.totalorder %s699_s13, %s699_s13 }
  0xf2   : > { %p2858_p7 = scmp.lt.s32.totalorder %s2856_s28, %s2849_s24 }
  0xf3   : > { %p2852_p2 = pnand %p2850_p10, %p3161_p0 }
  0xf4   : > { %p2859_p8 = por %p2858_p7, %p2857_p4 }
  0xf5   : > { %p2853_p3 = pneg %p2852_p2 }
  0xf7   : > { %p2860_p11 = pnand %p2859_p8, %p2853_p3 }
  0xf9   : > { %2863 = shalt.err (!%p2860_p11)
}
  0xfa   : > { %2538 = dma.hbm_to_vmem [thread:$0]  (!%p3145_p12), %s3630_s16, 16, %s699_s13, [#allocation15]  }
  0xfb   : > { %p3696_p13 = scmp.ne.s32.totalorder %s3687_s8, 0 }
  0xfc   : > { %p3697_p1 = scmp.eq.s32.totalorder (!%p3696_p13), %s3109_s6, 0 }
  0xfd   : > { %746 = sbr.rel (%p3696_p13) target bundleno = 4392 (0x1128), region = 116 }
 0x104   : > { %2909 = dma.done.wait (%p3697_p1), [#allocation3], 32   ;;  %p3698_p0 = pmov %p3697_p1 }
 0x106   : > { %2911 = vsyncadd (%p3698_p0), [#allocation3], 4294967264  ;;  %p3699_p6 = pmov %p3698_p0 }
 0x107   : > { %p3700_p5 = pmov %p3698_p0 }
 0x108   : > { %2913 = dma.done.wait (%p3699_p6), [#allocation6], 32  }
 0x109   : > { %2915 = vsyncadd (%p3700_p5), [#allocation6], 4294967264  ;;  %p3701_p9 = pmov %p3698_p0 }
 0x10a   : > { %p3702_p12 = pmov %p3698_p0 }
 0x10b   : > { %2917 = dma.done.wait (%p3701_p9), [#allocation9], 32  }
 0x10c   : > { %2919 = vsyncadd (%p3702_p12), [#allocation9], 4294967264  ;;  %p3703_p10 = pmov %p3698_p0 }
 0x10d   : > { %p3704_p2 = pmov %p3698_p0 }
 0x10e   : > { %2921 = dma.done.wait (%p3703_p10), [#allocation12], 32  }
 0x10f   : > { %2923 = vsyncadd (%p3704_p2), [#allocation12], 4294967264  ;;  %p3705_p3 = pmov %p3698_p0 }
 0x110   : > { %p3706_p4 = pmov %p3698_p0 }
 0x111   : > { %2925 = dma.done.wait (%p3705_p3), [#allocation15], 16  }
 0x112   : > { %2927 = vsyncadd (%p3706_p4), [#allocation15], 4294967280  ;;  %vm867_vm0 = vcmask 1040384   ;;  %v2956_v0 = vmov 0.0   ;;  %p843_p7 = scmp.lt.s32.totalorder %s3109_s6, 1  ;;  %vm868_vm1 = vcmask 1041408  }
 0x113   : > { %2350 = vmatprep.subr.bf16.mxu1 %v2956_v0  ;;  %2364 = vmatprep.subr.bf16.mxu0 %v2956_v0  ;;  %v2957_v1 = vmov 65535   ;;  %vm2958_vm2 = vmmov 0   ;;  %s3707_s13 = sld [smem:[#allocation32_spill]]  ;;  %v855_v4 = vld [vmem:[#allocation2] sm:$0x3]  ;;  %vm863_vm3 = vcmask 23552  }
 0x114   : > { %v869_v2 = vsel %vm867_vm0, 4294967295, %v2957_v1  ;;  %2352 = vmatprep.mubr.msk.bf16.mxu1 %vm2958_vm2, %v2956_v0  ;;  %2368 = vmatprep.mubr.msk.bf16.mxu0 %vm2958_vm2, %v2956_v0  ;;  %s3345_s8 = scalar_select %p843_p7, %s3109_s6, 1  ;;  %v2250_v10 = vld [vmem:[#allocation5] ss:$0 sm:$0xff]  ;;  %v2252_v12 = vld [vmem:[#allocation7] ss:$0 sm:$0xff] }
 0x115   : > { %v870_v3 = vsel %vm868_vm1, %v869_v2, 0  ;;  %s3708_s27 = sld [smem:[#allocation37_spill]]  ;;  %v2253_v15 = vld [vmem:[#allocation8] ss:$0 sm:$0xff]  ;;  %vm955_vm4 = vcmask 261120   ;;  %s3710_s3 = sld [smem:[#allocation39_spill]] }
 0x116   : > { %s2248_s7 = sshll.u32 %s3345_s8, 3  ;;  %v872_v6 = vand.u32 %v870_v3, %v855_v4  ;;  %v2609_v23 = vld [vmem:[%s3624_s10] sm:$0xff]   ;;  %v2611_v25 = vld [vmem:[%s3624_s10 + $0x8] sm:$0xff]   ;;  %s3711_s4 = sld [smem:[#allocation31_spill]]  ;;  %vm1200_vm5 = vcmask 64512   ;;  %vm1263_vm6 = vcmask 1043456  }
 0x117   : > { %v2254_v26 = vld [vmem:[#allocation10] ss:$0 sm:$0xff]  ;;  %v2262_v35 = vld [vmem:[%s3625_s11] ss:$0 sm:$0xff]  ;;  %s3712_s9 = sld [smem:[#allocation40_spill]]  ;;  %s2959_s30 = smov 120  }
 0x118   : > { %2351 = vmatpush3.bf16.msra.mxu1 %v872_v6  ;;  %v2612_v50 = vld [vmem:[%s3626_s12] sm:$0xff]   ;;  %v2613_v51 = vld [vmem:[%s3626_s12 + $0x8] sm:$0xff]   ;;  %s2960_s0 = smov 112   ;;  %s2961_s8 = smov 104   ;;  %vm1980_vm7 = vcmask 523264  }
 0x119   : > { %s850_s1 = scalar_lea.vmem %s3707_s13, %s2248_s7  ;;  %2356 = vmatprep.subr.bf16.mxu1 %v2956_v0  ;;  %s2301_s2 = sshll.u32 %s3109_s6, 7 }
 0x11a   : > { %v853_v5 = vld [vmem:[%s850_s1] sm:$0xff]  ;;  %s2962_s6 = smov [#allocation16]  }
 0x11b   : > { %v854_v7 = vpack.c.bf16 %v853_v5, %v853_v5  ;;  %s3709_s25 = smov %s3708_s27  ;;  %v2606_v8 = vld [vmem:[%s3708_s27] sm:$0xff]   ;;  %v2610_v24 = vld [vmem:[%s3710_s3 + $0x8] sm:$0xff]  }
 0x11c   : > { %v2607_v9 = vld [vmem:[%s3709_s25 + $0x8] sm:$0xff]   ;;  %v2608_v22 = vld [vmem:[%s3710_s3] sm:$0xff]   ;;  %s846_s5 = scalar_lea.vmem %s3711_s4, %s2248_s7  ;;  %s3714_s4 = sld [smem:[#allocation29_spill]] }
 0x11d   : > { %2353 = vmatmul.mubr.msk.bf16.vlgmr.msra.gmra.mrb[0].mxu1 %vm863_vm3, %v854_v7  ;;  %2365 = vmatpush3.bf16.msra.mxu0 %v2608_v22  ;;  %v3388_v27 = vld [vmem:[%s846_s5] sm:$0xff]  ;;  %s3715_s7 = sld [smem:[#allocation42_spill]] }
 0x11e   : > { %2360 = vmatprep.mubr.msk.bf16.mxu1 %vm2958_vm2, %v2956_v0  ;;  %2357 = vmatpush3.bf16.msra.mxu1 %v2606_v8  ;;  %v2258_v36 = vld [vmem:[%s3712_s9] ss:$0 sm:$0xff]  ;;  %v1001_v52 = vpack.c.bf16 %v3388_v27, %v3388_v27 }
 0x11f   : > { %2358 = vmatprep.subr.bf16.mxu1 %v2956_v0  ;;  %2366 = vmatprep.subr.bf16.mxu0 %v2956_v0 }
 0x121   : > { %2367 = vmatpush3.bf16.msra.mxu0 %v2610_v24 }
 0x122   : > { %2359 = vmatpush3.bf16.msra.mxu1 %v2607_v9  ;;  %2380 = vmatprep.subr.bf16.mxu0 %v2956_v0  ;;  %p3718_p11 = scmp.ne.s32.totalorder %s3714_s4, 0 }
 0x123   : > { %2372 = vmatprep.subr.bf16.mxu1 %v2956_v0 }
 0x1f0   : > { %v908_v11 = vpop.f32.mrb[0].mxu1 }
 0x1f1   : > { %v909_v13 = vadd.f32 %v2250_v10, %v908_v11  ;;  %v2354_v14 = vpop.f32.mrb[1].mxu1 }
 0x1f2   : > { %v911_v16 = vpop.f32.mrb[2].mxu1  ;;  %v2266_v14 = vld [vmem:[#allocation11] ss:$0 sm:$0xff] }
 0x1f3   : > { %v921_v17 = vmul.f32 %v2252_v12, %v909_v13  ;;  %v2355_v18 = vpop.f32.mrb[3].mxu1 }
 0x1f5   : > { %v929_v19 = vadd.f32 %v2253_v15, %v921_v17 }
 0x1f7   : > { %v930_v20 = vmax.f32 %v929_v19, 0.0 }
 0x1f9   : > { %v931_v21 = vpack.c.bf16 %v930_v20, %v930_v20 }
 0x1fb   : > { %2361 = vmatmul.mubr.msk.bf16.vlgmr.msra.gmra.mrb[4].mxu1 %vm955_vm4, %v931_v21 }
 0x1fc   : > { %2376 = vmatprep.mubr.msk.bf16.mxu1 %vm2958_vm2, %v2956_v0  ;;  %2373 = vmatpush3.bf16.msra.mxu1 %v2609_v23 }
 0x1fd   : > { %2374 = vmatprep.subr.bf16.mxu1 %v2956_v0 }
 0x200   : > { %2375 = vmatpush3.bf16.msra.mxu1 %v2611_v25 }
 0x201   : > { %2388 = vmatprep.subr.bf16.mxu1 %v2956_v0 }
 0x2ce   : > { %v993_v28 = vpop.f32.mrb[4].mxu1 }
 0x2cf   : > { %v994_v29 = vadd.f32 %v2254_v26, %v993_v28  ;;  %v2362_v30 = vpop.f32.mrb[5].mxu1  ;;  %v2274_v28 = vld [vmem:[%s3628_s14 + $0x4] sm:$0xf] }
 0x2d0   : > { %v996_v31 = vpop.f32.mrb[6].mxu1 }
 0x2d1   : > { %v999_v32 = vadd.f32 %v994_v29, %v3388_v27  ;;  %v2363_v33 = vpop.f32.mrb[7].mxu1  ;;  %v1430_v29 = vsel %vm1263_vm6, %v2274_v28, 0 }
 0x2d3   : > { %v1000_v34 = vpack.c.bf16 %v999_v32, %v999_v32 }
 0x2d5   : > { %2369 = vmatmul.mubr.msk.bf16.vlgmr.msra.gmra.mrb[0].mxu0 %vm955_vm4, %v1000_v34  ;;  %2377 = vmatmul.mubr.msk.bf16.vlgmr.msra.gmra.mrb[8].mxu1 %vm955_vm4, %v1000_v34  ;;  %v1308_v34 = vld [vmem:[%s3628_s14] sm:$0xf] }
 0x2d6   : > { %2390 = vmatprep.mubr.msk.bf16.mxu1 %vm2958_vm2, %v2956_v0  ;;  %2384 = vmatprep.mubr.msk.bf16.mxu0 %vm2958_vm2, %v2956_v0 }
 0x2d7   : > { %2381 = vmatpush3.bf16.msra.mxu0 %v2612_v50 }
 0x2d8   : > { %2382 = vmatprep.subr.bf16.mxu0 %v2956_v0 }
 0x2db   : > { %2383 = vmatpush3.bf16.msra.mxu0 %v2613_v51 }
 0x2dc   : > { %2394 = vmatprep.subr.bf16.mxu0 %v2956_v0 }
 0x2de   : > { %2385 = vmatmul.mubr.msk.bf16.vlgmr.msra.gmra.mrb[4].mxu0 %vm955_vm4, %v1001_v52 }
 0x2df   : > { %2396 = vmatprep.mubr.msk.bf16.mxu0 %vm2958_vm2, %v2956_v0 }
 0x3a8   : > { %v1062_v37 = vpop.f32.mrb[0].mxu0  ;;  %v1125_v38 = vpop.f32.mrb[8].mxu1 }
 0x3a9   : > { %v1126_v39 = vadd.f32 %v2262_v35, %v1125_v38  ;;  %v2370_v40 = vpop.f32.mrb[1].mxu0  ;;  %v2378_v41 = vpop.f32.mrb[9].mxu1  ;;  %v1063_v44 = vadd.f32 %v2258_v36, %v1062_v37  ;;  %v1476_v37 = vsel %vm1263_vm6, %v1308_v34, 0 }
 0x3aa   : > { %v1065_v42 = vpop.f32.mrb[2].mxu0  ;;  %v1128_v43 = vpop.f32.mrb[10].mxu1 }
 0x3ab   : > { %v3403_v45 = vpack.c.bf16 %v1126_v39, %v1126_v39  ;;  %v2371_v46 = vpop.f32.mrb[3].mxu0  ;;  %v2379_v47 = vpop.f32.mrb[11].mxu1  ;;  %v3409_v49 = vpack.c.bf16 %v1063_v44, %v1063_v44 }
 0x3ad   : > { %1313 = vrot.lane.b32.xlu0 %v3403_v45, %s2959_s30  ;;  %v1205_v48 = vsel %vm1200_vm5, %v3403_v45, 0 }
 0x3ae   : > { %2389 = vmatpush3.bf16.xpose.msra.mxu1 %v1205_v48 }
 0x3af   : > { %2400 = vmatprep.subr.bf16.mxu1 %v2956_v0 }
 0x3b1   : > { %1310 = vrot.lane.b32.xlu0 %v3409_v49, %s2959_s30  ;;  %v1191_v8 = vpop.f32.mrb[4].mxu0 }
 0x3b2   : > { %v2386_v9 = vpop.f32.mrb[5].mxu0  ;;  %v1192_v15 = vadd.f32 %v2266_v14, %v1191_v8 }
 0x3b3   : > { %v1194_v10 = vpop.f32.mrb[6].mxu0 }
 0x3b4   : > { %v2387_v11 = vpop.f32.mrb[7].mxu0  ;;  %v3439_v16 = vpack.c.bf16 %v1192_v15, %v1192_v15 }
 0x3b5   : > { %2391 = vmatmul.mubr.msk.bf16.vlgmr.msra.gmra.mrb[12].mxu1 %vm1200_vm5, %v3409_v49 }
 0x3b6   : > { %2402 = vmatprep.mubr.msk.bf16.mxu1 %vm2958_vm2, %v2956_v0  ;;  %v1265_v17 = vsel %vm1263_vm6, %v3439_v16, 0 }
 0x3b7   : > { %2395 = vmatpush3.bf16.msra.mxu0 %v1265_v17 }
 0x3b8   : > { %2406 = vmatprep.subr.bf16.mxu0 %v2956_v0 }
 0x41f   : > { %v1314_v53 = vpop.permute.xlu0 %1313 }
 0x420   : > { %v1319_v54 = vsel %vm1200_vm5, %v1314_v53, 0 }
 0x421   : > { %2401 = vmatpush3.bf16.xpose.msra.mxu1 %v1319_v54 }
 0x422   : > { %2412 = vmatprep.subr.bf16.mxu1 %v2956_v0 }
 0x423   : > { %v1311_v55 = vpop.permute.xlu0 %1310 }
 0x428   : > { %2403 = vmatmul.mubr.msk.bf16.vlgmr.msra.gmra.mrb[16].mxu1 %vm1200_vm5, %v1311_v55 }
 0x429   : > { %2414 = vmatprep.mubr.msk.bf16.mxu1 %vm2958_vm2, %v2956_v0  ;;  %2413 = vmatpush3.bf16.msra.mxu1 %v1430_v29 }
 0x42a   : > { %2424 = vmatprep.subr.bf16.mxu1 %v2956_v0 }
 0x488   : > { %v1241_v56 = vpop.f32.mrb[12].mxu1 }
 0x489   : > { %v1247_v57 = vmul.f32 0.35355338, %v1241_v56  ;;  %v2392_v58 = vpop.f32.mrb[13].mxu1 }
 0x48a   : > { %v1244_v59 = vpop.f32.mrb[14].mxu1 }
 0x48b   : > { %v2393_v60 = vpop.f32.mrb[15].mxu1  ;;  %v1248_v61 = vsel %vm1200_vm5, %v1247_v57, -inf }
 0x48c   : > { %1249 = vmax.xlane.f32.xlu1 %v1248_v61 }
 0x4fb   : > { %v1355_v62 = vpop.f32.mrb[16].mxu1 }
 0x4fc   : > { %v1361_v63 = vmul.f32 0.35355338, %v1355_v62  ;;  %v2404_v1 = vpop.f32.mrb[17].mxu1 }
 0x4fd   : > { %v1358_v2 = vpop.f32.mrb[18].mxu1 }
 0x4fe   : > { %v2405_v3 = vpop.f32.mrb[19].mxu1  ;;  %v1362_v4 = vsel %vm1200_vm5, %v1361_v63, -inf }
 0x4ff   : > { %1363 = vmax.xlane.f32.xlu1 %v1362_v4 }
 0x519   : > { %v1250_v5 = vpop.xlane.xlu1 %1249 }
 0x51a   : > { %v1251_v6 = vsub.f32 %v1247_v57, %v1250_v5 }
 0x51c   : > { %v1252_v7 = vmul.f32 1.442695, %v1251_v6 }
 0x51e   : > { %2620 = vpow2.f32 %v1252_v7 }
 0x528   : > { %v2621_v12 = vpop.eup %2620 }
 0x529   : > { %v1254_v13 = vsel %vm1200_vm5, %v2621_v12, 0.0 }
 0x52a   : > { %1255 = vadd.xlane.f32.xlu0 %v1254_v13 }
 0x540   : > { %1581 = vrot.lane.b32.xlu0 %v3439_v16, %s2960_s0 }
 0x58c   : > { %v1364_v18 = vpop.xlane.xlu1 %1363 }
 0x58d   : > { %v1365_v19 = vsub.f32 %v1361_v63, %v1364_v18 }
 0x58f   : > { %v1366_v20 = vmul.f32 1.442695, %v1365_v19 }
 0x591   : > { %2622 = vpow2.f32 %v1366_v20 }
 0x59b   : > { %v2623_v21 = vpop.eup %2622 }
 0x59c   : > { %v1368_v22 = vsel %vm1200_vm5, %v2623_v21, 0.0 }
 0x59d   : > { %1369 = vadd.xlane.f32.xlu1 %v1368_v22 }
 0x5ae   : > { %1375 = vrot.lane.b32.xlu1 %v3439_v16, %s2959_s30  ;;  %s3716_s30 = sld [smem:[#allocation43_spill]] }
 0x5b2   : > { %1520 = vrot.lane.b32.xlu1 %v3403_v45, %s2960_s0 }
 0x5b6   : > { %1518 = vrot.lane.b32.xlu1 %v3409_v49, %s2960_s0  ;;  %s3713_s0 = sld [smem:[#allocation24_spill]] }
 0x5b7   : > { %v1256_v23 = vpop.xlane.xlu0 %1255 }
 0x5b8   : > { %2624 = vrcp.f32 %v1256_v23 }
 0x5bb   : > { %v1582_v38 = vpop.permute.xlu0 %1581 }
 0x5bc   : > { %v1587_v43 = vsel %vm1263_vm6, %v1582_v38, 0  ;;  %s840_s26 = sand.u32 1, %s3713_s0   ;;  %s3717_s0 = sld [smem:[#allocation44_spill]] }
 0x5bd   : > { %s2247_s27 = sshll.u32 %s840_s26, 3  ;;  %s2064_s5 = scalar_lea.sflag [#allocation4], %s840_s26 }
 0x5be   : > { %s842_s29 = scalar_lea.vmem [#allocation16], %s2247_s27  ;;  %s2868_s27 = sshll.u32 %s2962_s6, 4  ;;  %s2869_s27 = int_to_ptr.vmem [resolvable:$false] %s2868_s27 }
 0x5bf   : > { %s2077_s13 = sshll.u32 %s842_s29, 4  ;;  %s3573_s13 = int_to_ptr.vmem [resolvable:$true] %s2077_s13 }
 0x5c0   : > { %p2871_p0 = scmp.lt.s32.totalorder %s3573_s13, %s2869_s27 }
 0x5c2   : > { %v2625_v24 = vpop.eup %2624  ;;  %s3571_s9 = scalar_lea.hbm %s3717_s0, %s2301_s2 }
 0x5c3   : > { %v1258_v25 = vmul.f32 %v2625_v24, %v2621_v12 }
 0x5c5   : > { %v1259_v26 = vpack.c.bf16 %v1258_v25, %v1258_v25 }
 0x5c7   : > { %2397 = vmatmul.mubr.msk.bf16.vlgmr.msra.gmra.mrb[8].mxu0 %vm1200_vm5, %v1259_v26 }
 0x5c8   : > { %2408 = vmatprep.mubr.msk.bf16.mxu0 %vm2958_vm2, %v2956_v0 }
 0x62a   : > { %v1370_v30 = vpop.xlane.xlu1 %1369 }
 0x62b   : > { %2626 = vrcp.f32 %v1370_v30 }
 0x62e   : > { %v1376_v31 = vpop.permute.xlu1 %1375 }
 0x62f   : > { %v1381_v32 = vsel %vm1263_vm6, %v1376_v31, 0 }
 0x630   : > { %2407 = vmatpush3.bf16.msra.mxu0 %v1381_v32 }
 0x631   : > { %2418 = vmatprep.subr.bf16.mxu0 %v2956_v0 }
 0x632   : > { %v1521_v46 = vpop.permute.xlu1 %1520 }
 0x633   : > { %v1526_v52 = vsel %vm1200_vm5, %v1521_v46, 0 }
 0x635   : > { %v2627_v33 = vpop.eup %2626 }
 0x636   : > { %v1372_v35 = vmul.f32 %v2627_v33, %v2623_v21  ;;  %v1519_v54 = vpop.permute.xlu1 %1518 }
 0x638   : > { %v1373_v36 = vpack.c.bf16 %v1372_v35, %v1372_v35 }
 0x63a   : > { %2409 = vmatmul.mubr.msk.bf16.vlgmr.msra.gmra.mrb[12].mxu0 %vm1200_vm5, %v1373_v36 }
 0x63b   : > { %2419 = vmatpush3.bf16.msra.mxu0 %v1476_v37  ;;  %2420 = vmatprep.mubr.msk.bf16.mxu0 %vm2958_vm2, %v2956_v0  ;;  %v2283_v37 = vld [vmem:[%s3628_s14 + $0xc] sm:$0xf] }
 0x63c   : > { %2430 = vmatprep.subr.bf16.mxu0 %v2956_v0  ;;  %v1797_v38 = vsel %vm1263_vm6, %v2283_v37, 0 }
 0x69a   : > { %v1301_v39 = vpop.f32.mrb[8].mxu0 }
 0x69b   : > { %v1307_v40 = vpack.c.bf16 %v1301_v39, %v1301_v39  ;;  %v2398_v41 = vpop.f32.mrb[9].mxu0 }
 0x69c   : > { %v1304_v42 = vpop.f32.mrb[10].mxu0 }
 0x69d   : > { %v2399_v44 = vpop.f32.mrb[11].mxu0  ;;  %2421 = vmatmul.mubr.msk.bf16.vlgmr.msra.gmra.mrb[16].mxu0 %vm1200_vm5, %v1307_v40 }
 0x69e   : > { %2431 = vmatpush3.bf16.msra.mxu0 %v1587_v43  ;;  %2432 = vmatprep.mubr.msk.bf16.mxu0 %vm2958_vm2, %v2956_v0 }
 0x69f   : > { %2442 = vmatprep.subr.bf16.mxu0 %v2956_v0 }
 0x70d   : > { %v1417_v47 = vpop.f32.mrb[12].mxu0 }
 0x70e   : > { %v1423_v48 = vpack.c.bf16 %v1417_v47, %v1417_v47  ;;  %v2410_v50 = vpop.f32.mrb[13].mxu0 }
 0x70f   : > { %v1420_v51 = vpop.f32.mrb[14].mxu0 }
 0x710   : > { %v2411_v53 = vpop.f32.mrb[15].mxu0  ;;  %2415 = vmatmul.mubr.msk.bf16.vlgmr.msra.gmra.mrb[20].mxu1 %vm1200_vm5, %v1423_v48 }
 0x711   : > { %2425 = vmatpush3.bf16.xpose.msra.mxu1 %v1526_v52  ;;  %2426 = vmatprep.mubr.msk.bf16.mxu1 %vm2958_vm2, %v2956_v0 }
 0x712   : > { %2436 = vmatprep.subr.bf16.mxu1 %v2956_v0 }
 0x718   : > { %2427 = vmatmul.mubr.msk.bf16.vlgmr.msra.gmra.mrb[24].mxu1 %vm1200_vm5, %v1519_v54 }
 0x719   : > { %2438 = vmatprep.mubr.msk.bf16.mxu1 %vm2958_vm2, %v2956_v0 }
 0x770   : > { %v1512_v55 = vpop.f32.mrb[16].mxu0 }
 0x771   : > { %v2422_v56 = vpop.f32.mrb[17].mxu0 }
 0x772   : > { %v1515_v57 = vpop.f32.mrb[18].mxu0 }
 0x773   : > { %v2423_v58 = vpop.f32.mrb[19].mxu0  ;;  %v2285_v57 = vld [vmem:[#allocation13] ss:$0 sm:$0xff] }
 0x7e3   : > { %v1466_v59 = vpop.f32.mrb[20].mxu1 }
 0x7e4   : > { %v3481_v60 = vadd.f32 %v1512_v55, %v1466_v59  ;;  %v2416_v61 = vpop.f32.mrb[21].mxu1 }
 0x7e5   : > { %v1469_v62 = vpop.f32.mrb[22].mxu1 }
 0x7e6   : > { %v2417_v63 = vpop.f32.mrb[23].mxu1 }
 0x7eb   : > { %v1562_v1 = vpop.f32.mrb[24].mxu1 }
 0x7ec   : > { %v1568_v2 = vmul.f32 0.35355338, %v1562_v1  ;;  %v2428_v3 = vpop.f32.mrb[25].mxu1 }
 0x7ed   : > { %v1565_v4 = vpop.f32.mrb[26].mxu1 }
 0x7ee   : > { %v2429_v5 = vpop.f32.mrb[27].mxu1  ;;  %v1569_v6 = vsel %vm1200_vm5, %v1568_v2, -inf }
 0x7ef   : > { %1570 = vmax.xlane.f32.xlu1 %v1569_v6 }
 0x87c   : > { %v1571_v7 = vpop.xlane.xlu1 %1570 }
 0x87d   : > { %v1572_v8 = vsub.f32 %v1568_v2, %v1571_v7  ;;  %v2614_v7 = vld [vmem:[%s3632_s18] sm:$0xff]  }
 0x87f   : > { %v1573_v9 = vmul.f32 1.442695, %v1572_v8  ;;  %v2615_v8 = vld [vmem:[%s3632_s18 + $0x8] sm:$0xff]  }
 0x881   : > { %2628 = vpow2.f32 %v1573_v9  ;;  %v2617_v9 = vld [vmem:[%s3634_s20 + $0x8] sm:$0xff]  }
 0x88b   : > { %v2629_v10 = vpop.eup %2628 }
 0x88c   : > { %v1575_v11 = vsel %vm1200_vm5, %v2629_v10, 0.0 }
 0x88d   : > { %1576 = vadd.xlane.f32.xlu0 %v1575_v11 }
 0x8a3   : > { %1681 = vrot.lane.b32.xlu0 %v3403_v45, %s2961_s8 }
 0x8a7   : > { %1679 = vrot.lane.b32.xlu0 %v3409_v49, %s2961_s8  ;;  %v2279_v49 = vld [vmem:[%s3628_s14 + $0x8] sm:$0xf] }
 0x8a8   : > { %v1636_v19 = vsel %vm1263_vm6, %v2279_v49, 0 }
 0x8a9   : > { %2437 = vmatpush3.bf16.msra.mxu1 %v1636_v19  ;;  %v2618_v19 = vld [vmem:[%s3634_s20 + $0x10] sm:$0xff]  }
 0x8aa   : > { %2448 = vmatprep.subr.bf16.mxu1 %v2956_v0 }
 0x91a   : > { %v1577_v12 = vpop.xlane.xlu0 %1576 }
 0x91b   : > { %2630 = vrcp.f32 %v1577_v12 }
 0x91e   : > { %v1682_v15 = vpop.permute.xlu0 %1681 }
 0x91f   : > { %v1687_v18 = vsel %vm1200_vm5, %v1682_v15, 0 }
 0x922   : > { %v1680_v45 = vpop.permute.xlu0 %1679 }
 0x925   : > { %v2631_v13 = vpop.eup %2630 }
 0x926   : > { %v1579_v14 = vmul.f32 %v2631_v13, %v2629_v10 }
 0x928   : > { %v1580_v17 = vpack.c.bf16 %v1579_v14, %v1579_v14  ;;  %v2286_v14 = vld [vmem:[#allocation14] ss:$0 sm:$0xff] }
 0x92a   : > { %2433 = vmatmul.mubr.msk.bf16.vlgmr.msra.gmra.mrb[20].mxu0 %vm1200_vm5, %v1580_v17  ;;  %v2287_v17 = vld [vmem:[%s3631_s17] ss:$0 sm:$0xff] }
 0x92b   : > { %2443 = vmatpush3.bf16.xpose.msra.mxu0 %v1687_v18  ;;  %2444 = vmatprep.mubr.msk.bf16.mxu0 %vm2958_vm2, %v2956_v0 }
 0x92c   : > { %2454 = vmatprep.subr.bf16.mxu0 %v2956_v0 }
 0x932   : > { %2445 = vmatmul.mubr.msk.bf16.vlgmr.msra.gmra.mrb[24].mxu0 %vm1200_vm5, %v1680_v45 }
 0x933   : > { %2456 = vmatprep.mubr.msk.bf16.mxu0 %vm2958_vm2, %v2956_v0  ;;  %2455 = vmatpush3.bf16.msra.mxu0 %v1797_v38 }
 0x934   : > { %2468 = vmatprep.subr.bf16.mxu0 %v2956_v0 }
 0x9fd   : > { %v1623_v20 = vpop.f32.mrb[20].mxu0 }
 0x9fe   : > { %v1629_v21 = vpack.c.bf16 %v1623_v20, %v1623_v20  ;;  %v2434_v22 = vpop.f32.mrb[21].mxu0  ;;  %v2619_v20 = vld [vmem:[%s3634_s20 + $0x18] sm:$0xff]  }
 0x9ff   : > { %v1626_v23 = vpop.f32.mrb[22].mxu0 }
 0xa00   : > { %v2435_v24 = vpop.f32.mrb[23].mxu0  ;;  %2439 = vmatmul.mubr.msk.bf16.vlgmr.msra.gmra.mrb[28].mxu1 %vm1200_vm5, %v1629_v21  ;;  %v2288_v21 = vld [vmem:[%s3633_s19] ss:$0 sm:$0xff] }
 0xa01   : > { %2450 = vmatprep.mubr.msk.bf16.mxu1 %vm2958_vm2, %v2956_v0 }
 0xa05   : > { %v1723_v25 = vpop.f32.mrb[24].mxu0 }
 0xa06   : > { %v1729_v26 = vmul.f32 0.35355338, %v1723_v25  ;;  %v2446_v28 = vpop.f32.mrb[25].mxu0 }
 0xa07   : > { %v1726_v29 = vpop.f32.mrb[26].mxu0 }
 0xa08   : > { %v2447_v30 = vpop.f32.mrb[27].mxu0  ;;  %v1730_v31 = vsel %vm1200_vm5, %v1729_v26, -inf }
 0xa09   : > { %1731 = vmax.xlane.f32.xlu0 %v1730_v31 }
 0xa96   : > { %v1732_v32 = vpop.xlane.xlu0 %1731 }
 0xa97   : > { %v1733_v33 = vsub.f32 %v1729_v26, %v1732_v32 }
 0xa99   : > { %v1734_v34 = vmul.f32 1.442695, %v1733_v33 }
 0xa9b   : > { %2632 = vpow2.f32 %v1734_v34 }
 0xaa5   : > { %v2633_v35 = vpop.eup %2632 }
 0xaa6   : > { %v1736_v36 = vsel %vm1200_vm5, %v2633_v35, 0.0 }
 0xaa7   : > { %1737 = vadd.xlane.f32.xlu1 %v1736_v36 }
 0xab8   : > { %1742 = vrot.lane.b32.xlu1 %v3439_v16, %s2961_s8  ;;  %s2864_s8 = scalar_lea.vmem %s3573_s13, 128 }
 0xab9   : > { %p2865_p8 = scmp.ne.s32.totalorder %s3573_s13, %s2864_s8 }
 0xabb   : > { %p2866_p13 = pnand %p2865_p8, %p3718_p11 }
 0xabd   : > { %p2867_p1 = pneg %p2866_p13 }
 0xad3   : > { %v1672_v39 = vpop.f32.mrb[28].mxu1 }
 0xad4   : > { %v1678_v40 = vadd.f32 %v1672_v39, %v3481_v60  ;;  %v2440_v41 = vpop.f32.mrb[29].mxu1 }
 0xad5   : > { %v1675_v42 = vpop.f32.mrb[30].mxu1 }
 0xad6   : > { %v2441_v43 = vpop.f32.mrb[31].mxu1 }
 0xb34   : > { %v1738_v44 = vpop.xlane.xlu1 %1737 }
 0xb35   : > { %2634 = vrcp.f32 %v1738_v44 }
 0xb38   : > { %v1743_v46 = vpop.permute.xlu1 %1742 }
 0xb39   : > { %v1748_v16 = vsel %vm1263_vm6, %v1743_v46, 0 }
 0xb3a   : > { %2449 = vmatpush3.bf16.msra.mxu1 %v1748_v16  ;;  %v2298_v16 = vld [vmem:[%s3715_s7] ss:$0 sm:$0xff]  ;;  %s2870_s7 = scalar_lea.vmem %s2869_s27, 256 }
 0xb3b   : > { %2460 = vmatprep.subr.bf16.mxu1 %v2956_v0  ;;  %p2872_p6 = scmp.lt.s32.totalorder %s2870_s7, %s2864_s8 }
 0xb3d   : > { %p2873_p5 = por %p2872_p6, %p2871_p0 }
 0xb3f   : > { %v2635_v47 = vpop.eup %2634  ;;  %p2874_p9 = pnand %p2873_p5, %p2867_p1 }
 0xb40   : > { %v1740_v48 = vmul.f32 %v2635_v47, %v2633_v35 }
 0xb42   : > { %v1741_v50 = vpack.c.bf16 %v1740_v48, %v1740_v48  ;;  %v2299_v48 = vld [vmem:[%s3716_s30] ss:$0 sm:$0xff] }
 0xb44   : > { %2451 = vmatmul.mubr.msk.bf16.vlgmr.msra.gmra.mrb[32].mxu1 %vm1200_vm5, %v1741_v50 }
 0xb45   : > { %2464 = vmatprep.mubr.msk.bf16.mxu1 %vm2958_vm2, %v2956_v0  ;;  %2461 = vmatpush3.bf16.msra.mxu1 %v2614_v7 }
 0xb46   : > { %2462 = vmatprep.subr.bf16.mxu1 %v2956_v0 }
 0xb49   : > { %2463 = vmatpush3.bf16.msra.mxu1 %v2615_v8 }
 0xc17   : > { %v1784_v51 = vpop.f32.mrb[32].mxu1 }
 0xc18   : > { %v1790_v52 = vpack.c.bf16 %v1784_v51, %v1784_v51  ;;  %v2452_v53 = vpop.f32.mrb[33].mxu1 }
 0xc19   : > { %v1787_v54 = vpop.f32.mrb[34].mxu1 }
 0xc1a   : > { %v2453_v55 = vpop.f32.mrb[35].mxu1  ;;  %2457 = vmatmul.mubr.msk.bf16.vlgmr.msra.gmra.mrb[28].mxu0 %vm1200_vm5, %v1790_v52 }
 0xc1b   : > { %2476 = vmatprep.mubr.msk.bf16.mxu0 %vm2958_vm2, %v2956_v0 }
 0xced   : > { %v1833_v56 = vpop.f32.mrb[28].mxu0 }
 0xcee   : > { %v1839_v58 = vadd.f32 %v1833_v56, %v1678_v40  ;;  %v2458_v59 = vpop.f32.mrb[29].mxu0 }
 0xcef   : > { %v1836_v60 = vpop.f32.mrb[30].mxu0 }
 0xcf0   : > { %v1847_v61 = vadd.f32 %v2285_v57, %v1839_v58  ;;  %v2459_v62 = vpop.f32.mrb[31].mxu0 }
 0xcf2   : > { %v1848_v63 = vadd.f32 %v1847_v61, %v3388_v27  ;;  %v2616_v27 = vld [vmem:[%s3634_s20] sm:$0xff]  }
 0xcf3   : > { %2469 = vmatpush3.bf16.msra.mxu0 %v2616_v27 }
 0xcf4   : > { %v1849_v1 = vsel %vm955_vm4, %v1848_v63, 0.0  ;;  %2470 = vmatprep.subr.bf16.mxu0 %v2956_v0 }
 0xcf5   : > { %1850 = vadd.xlane.f32.xlu1 %v1849_v1 }
 0xcf7   : > { %2471 = vmatpush3.bf16.msra.mxu0 %v2617_v9 }
 0xcf8   : > { %2472 = vmatprep.subr.bf16.mxu0 %v2956_v0 }
 0xcfb   : > { %2473 = vmatpush3.bf16.msra.mxu0 %v2618_v19 }
 0xcfc   : > { %2474 = vmatprep.subr.bf16.mxu0 %v2956_v0  ;;  %v2297_v0 = vld [vmem:[%s3635_s21] ss:$0 sm:$0xff] }
 0xcff   : > { %2475 = vmatpush3.bf16.msra.mxu0 %v2619_v20 }
 0xd82   : > { %v1851_v2 = vpop.xlane.xlu1 %1850 }
 0xd83   : > { %v1853_v3 = vmul.f32 0.03125, %v1851_v2 }
 0xd85   : > { %v1854_v4 = vsub.f32 %v1848_v63, %v1853_v3 }
 0xd87   : > { %v1855_v5 = vmul.f32 %v1854_v4, %v1854_v4 }
 0xd89   : > { %v1856_v6 = vsel %vm955_vm4, %v1855_v5, 0.0 }
 0xd8a   : > { %1857 = vadd.xlane.f32.xlu0 %v1856_v6 }
 0xe17   : > { %v1858_v10 = vpop.xlane.xlu0 %1857 }
 0xe18   : > { %v1859_v11 = vmul.f32 0.03125, %v1858_v10 }
 0xe1a   : > { %v1860_v12 = vadd.f32 1e-05, %v1859_v11 }
 0xe1c   : > { %2636 = vrsqrt.f32 %v1860_v12 }
 0xe26   : > { %v2637_v13 = vpop.eup %2636 }
 0xe27   : > { %v1862_v15 = vmul.f32 %v2637_v13, %v1854_v4 }
 0xe29   : > { %v1870_v18 = vmul.f32 %v2286_v14, %v1862_v15 }
 0xe2b   : > { %v1878_v45 = vadd.f32 %v2287_v17, %v1870_v18 }
 0xe2d   : > { %v1879_v49 = vpack.c.bf16 %v1878_v45, %v1878_v45 }
 0xe2f   : > { %2465 = vmatmul.mubr.msk.bf16.vlgmr.msra.gmra.mrb[36].mxu1 %vm955_vm4, %v1879_v49 }
 0xf02   : > { %v1940_v22 = vpop.f32.mrb[36].mxu1 }
 0xf03   : > { %v1941_v23 = vadd.f32 %v2288_v21, %v1940_v22  ;;  %v2466_v24 = vpop.f32.mrb[37].mxu1 }
 0xf04   : > { %v1943_v25 = vpop.f32.mrb[38].mxu1 }
 0xf05   : > { %v1946_v26 = vmax.f32 %v1941_v23, 0.0  ;;  %v2467_v28 = vpop.f32.mrb[39].mxu1 }
 0xf07   : > { %v1947_v29 = vpack.c.bf16 %v1946_v26, %v1946_v26 }
 0xf09   : > { %2477 = vmatmul.mubr.msk.bf16.vlgmr.msra.gmra.mrb[32].mxu0 %vm1980_vm7, %v1947_v29 }
 0xfdc   : > { %v2018_v30 = vpop.f32.mrb[32].mxu0 }
 0xfdd   : > { %v2024_v31 = vadd.f32 %v2018_v30, %v1878_v45  ;;  %v2478_v32 = vpop.f32.mrb[33].mxu0 }
 0xfde   : > { %v2021_v33 = vpop.f32.mrb[34].mxu0 }
 0xfdf   : > { %v2479_v34 = vpop.f32.mrb[35].mxu0  ;;  %v2032_v35 = vadd.f32 %v2297_v0, %v2024_v31 }
 0xfe1   : > { %v2033_v36 = vsel %vm955_vm4, %v2032_v35, 0.0 }
 0xfe2   : > { %2034 = vadd.xlane.f32.xlu0 %v2033_v36 }
0x106f   : > { %v2035_v37 = vpop.xlane.xlu0 %2034 }
0x1070   : > { %v2036_v38 = vmul.f32 0.03125, %v2035_v37 }
0x1072   : > { %v2037_v39 = vsub.f32 %v2032_v35, %v2036_v38 }
0x1074   : > { %v2038_v40 = vmul.f32 %v2037_v39, %v2037_v39 }
0x1076   : > { %v2039_v41 = vsel %vm955_vm4, %v2038_v40, 0.0 }
0x1077   : > { %2040 = vadd.xlane.f32.xlu0 %v2039_v41 }
0x1104   : > { %v2041_v42 = vpop.xlane.xlu0 %2040 }
0x1105   : > { %v2042_v43 = vmul.f32 0.03125, %v2041_v42 }
0x1107   : > { %v2043_v44 = vadd.f32 1e-05, %v2042_v43 }
0x1109   : > { %2638 = vrsqrt.f32 %v2043_v44 }
0x1113   : > { %v2639_v46 = vpop.eup %2638 }
0x1114   : > { %v2045_v47 = vmul.f32 %v2639_v46, %v2037_v39 }
0x1116   : > { %v2053_v50 = vmul.f32 %v2298_v16, %v2045_v47 }
0x1118   : > { %v2061_v51 = vadd.f32 %v2299_v48, %v2053_v50 }
0x111a   : > { %2062 = vst.msk [vmem:[%s842_s29] sm:$0xff] %vm955_vm4, %v2061_v51 }
0x111b   : > { %2877 = shalt.err (!%p2874_p9)
}
0x111c   : > { %s2878_s3 = scalar_lea.hbm %s3571_s9, 128  ;;  %s2882_s28 = scalar_lea.hbm %s3717_s0, 256 }
0x111d   : > { %p2879_p12 = scmp.ne.s32.totalorder %s3571_s9, %s2878_s3  ;;  %p2883_p3 = scmp.lt.u32.totalorder %s3571_s9, %s3717_s0 }
0x111e   : > { %p2884_p4 = scmp.lt.u32.totalorder %s2882_s28, %s2878_s3  ;;  %p2886_p8 = scmp.lt.u32.totalorder %s2878_s3, %s3571_s9 }
0x111f   : > { %p2880_p10 = pnand %p2879_p12, %p3718_p11 }
0x1120   : > { %p2885_p7 = por %p2884_p4, %p2883_p3 }
0x1121   : > { %p2881_p2 = pneg %p2880_p10 }
0x1122   : > { %p2887_p13 = por %p2886_p8, %p2885_p7 }
0x1124   : > { %p2888_p1 = pnand %p2887_p13, %p2881_p2 }
0x1126   : > { %2891 = shalt.err (!%p2888_p1)
}
0x1127   : > { %2512 = dma.vmem_to_hbm [thread:$0]  (%p3718_p11), %s3573_s13, 128, %s3571_s9, %s2064_s5  }
0x1128 PF: > { %s3719_s29 = sld [smem:[#allocation26_spill]]  ;;  %s3720_s1 = sld [smem:[#allocation23_spill]] }
0x1129   : > { %s3721_s8 = sld [smem:[#allocation30_spill]] }
0x112e   : > { %p2559_p0 = scmp.ge.s32.totalorder %s3719_s29, 2  ;;  %s2089_s6 = sand.u32 1, %s3720_s1  }
0x112f   : > { %p3722_p6 = scmp.ne.s32.totalorder %s3721_s8, 0  ;;  %s2090_s27 = scalar_lea.sflag [#allocation4], %s2089_s6 }
0x1131   : > { %p2540_p5 = pnand %p2559_p0, %p3722_p6 }
0x1133   : > { %2929 = dma.done.wait (!%p2540_p5), %s2090_s27, 128  }
0x1134   : > { %2931 = vsyncadd (!%p2540_p5), %s2090_s27, 4294967168  ;;  %s3723_s28 = sld [smem:[#allocation27_spill]]  ;;  %s3724_s5 = sld [smem:[#allocation24_spill]] }
0x1135   : > { %s3725_s26 = sld [smem:[#allocation25_spill]]  ;;  %s3726_s27 = sld [smem:[#allocation28_spill]] }
0x113a   : > { %p39_p9 = scmp.ge.s32.totalorder %s3723_s28, 4  }
0x113c   :  { %41 = sbr.rel (!%p39_p9) target bundleno = 23 (0x17), region = 190 }
0x1143   :  { %2095 = vsyncpa [#allocation3], 1 }
0x1144   :  { %2097 = vsyncpa [#allocation3 + $0x1], 1 }
0x1145   :  { %2098 = vsyncpa [#allocation6], 1 }
0x1146   :  { %2099 = vsyncpa [#allocation9], 1 }
0x1147   :  { %2100 = vsyncpa [#allocation12], 1 }
0x1148   :  { %2101 = vsyncpa [#allocation15], 1 }
0x1149   :  { %2102 = vsyncpa [#allocation4], 1 }
0x114a   :  { %2104 = vsyncpa [#allocation4 + $0x1], 1 }

</bundles_post_ra>
